<compile_context>
chip_gen: v6e
topology: v6e:2x2x1
jax: 0.10.0
libtpu: 0.0.40
codegen_flags: <defaults>
</compile_context>

<pallas_src>
import functools

import jax
import jax.numpy as jnp
from jax.experimental import pallas as pl
from jax.experimental.pallas import tpu as pltpu


def _round_up(v, m):
    return ((v + m - 1) // m) * m


def _sage_mini_kernel(*refs, num_layers):
    # refs = (a_ref, x_ref, wl_0, wr_0, b_0, ..., wl_{L-1}, wr_{L-1}, b_{L-1}, o_ref)
    a_ref, x_ref = refs[0], refs[1]
    o_ref = refs[-1]
    w_refs = refs[2:-1]

    a = a_ref[...]                        # (n_pad, n_pad) row-normalized adjacency (zero padded)
    h = x_ref[...]                        # (n_pad, f_pad) features (zero padded)
    for layer in range(num_layers):       # unrolled at trace time
        wl = w_refs[3 * layer][...]       # (f_pad, f_pad) neighbor weight (pre-transposed, padded)
        wr = w_refs[3 * layer + 1][...]   # (f_pad, f_pad) root weight (pre-transposed, padded)
        b = w_refs[3 * layer + 2][...]    # (1, f_pad) bias of the neighbor linear
        # (A @ h) @ W_l  ==  A @ (h @ W_l): reassociated, same flop count here.
        neigh = jnp.dot(h, wl, preferred_element_type=jnp.float32)
        out = jnp.dot(a, neigh, preferred_element_type=jnp.float32)
        out = out + jnp.dot(h, wr, preferred_element_type=jnp.float32)
        out = out + b
        if layer < num_layers - 1:
            out = jnp.maximum(out, 0.0)   # ReLU; dropout is identity in eval mode
        h = out
    o_ref[...] = h.astype(o_ref.dtype)


def build_sage_mini_forward(a, params):
    """Pads adjacency + weights once, returns a jitted forward(x) closure.

    params: list of (W_l, W_r, b) with W_* stored pre-transposed as (F_in, F_out)
            and b of shape (1, F_out).
    a:      (N, N) row-normalized dense adjacency.
    """
    n = a.shape[0]
    num_layers = len(params)
    f_in = params[0][0].shape[0]
    out_channels = params[-1][0].shape[1]

    widths = [f_in] + [w_l.shape[1] for (w_l, _, _) in params]
    f_pad = _round_up(max(widths + [128]), 128)   # lane-dense feature width
    n_pad = _round_up(max(n, 128), 128)           # lane-dense adjacency / MXU-friendly K

    # --- one-time padding (cached; NOT in the per-call path) -----------------
    a_p = jnp.pad(a, ((0, n_pad - n), (0, n_pad - n)))
    flat = []
    for (w_l, w_r, b) in params:
        fi, fo = w_l.shape
        flat.append(jnp.pad(w_l, ((0, f_pad - fi), (0, f_pad - fo))))
        flat.append(jnp.pad(w_r, ((0, f_pad - fi), (0, f_pad - fo))))
        flat.append(jnp.pad(b, ((0, 0), (0, f_pad - b.shape[1]))))

    kernel = functools.partial(_sage_mini_kernel, num_layers=num_layers)
    n_inputs = 2 + 3 * num_layers

    # Grid-less call: whole problem is VMEM-resident, no pipeline machinery.
    call = pl.pallas_call(
        kernel,
        out_shape=jax.ShapeDtypeStruct((n_pad, f_pad), jnp.float32),
        in_specs=[pl.BlockSpec(memory_space=pltpu.MemorySpace.VMEM)] * n_inputs,
        out_specs=pl.BlockSpec(memory_space=pltpu.MemorySpace.VMEM),
    )

    @jax.jit
    def forward(x):
        # x-pad + kernel + output slice fuse into one compiled executable.
        x_p = jnp.pad(x, ((0, n_pad - x.shape[0]), (0, f_pad - x.shape[1])))
        out = call(a_p, x_p, *flat)
        return out[:n, :out_channels]

    return forward


def init_sage_params(key, in_channels, hidden_channels, out_channels,
                     num_layers):
    """Deterministic parameter init matching SAGE_Mini layer shapes.

    Each SAGEConv holds: W_l (neighbor lin, with bias) and W_r (root lin,
    no bias). Weights stored pre-transposed as (F_in, F_out).
    """
    dims = ([in_channels] + [hidden_channels] * (num_layers - 1),
            [hidden_channels] * (num_layers - 1) + [out_channels])
    params = []
    for f_in, f_out in zip(*dims):
        key, k1, k2 = jax.random.split(key, 3)
        scale = 1.0 / jnp.sqrt(jnp.float32(f_in))
        w_l = jax.random.uniform(k1, (f_in, f_out), jnp.float32, -scale, scale)
        w_r = jax.random.uniform(k2, (f_in, f_out), jnp.float32, -scale, scale)
        b = jnp.zeros((1, f_out), jnp.float32)
        params.append((w_l, w_r, b))
    return params


def build_row_normalized_adjacency(key, n):
    """Random dense graph, every node guaranteed >=1 neighbor, row-normalized."""
    adj = (jax.random.uniform(key, (n, n)) < 0.15).astype(jnp.float32)
    # guarantee at least one in-edge per row: edge from node (i+1) % n
    ring = jnp.roll(jnp.eye(n, dtype=jnp.float32), shift=1, axis=1)
    adj = jnp.maximum(adj, ring)
    deg = jnp.sum(adj, axis=1, keepdims=True)
    return adj / deg


if __name__ == "__main__":
    # Small synthetic problem consistent with SAGE_Mini:
    #   N=64 nodes, in_channels=32, hidden_channels=32, out_channels=16,
    #   num_layers=3, dropout=0.5 (identity in eval).
    N, IN_C, HID_C, OUT_C, NUM_LAYERS = 64, 32, 32, 16, 3

    root = jax.random.PRNGKey(0)
    k_x, k_a, k_p = jax.random.split(root, 3)

    x = jax.random.normal(k_x, (N, IN_C), jnp.float32)
    a = build_row_normalized_adjacency(k_a, N)
    params = init_sage_params(k_p, IN_C, HID_C, OUT_C, NUM_LAYERS)

    forward = build_sage_mini_forward(a, params)
    out = forward(x)
    out = jax.block_until_ready(out)

    # Pure-JAX reference check (same math, original association, no Pallas).
    ref = x
    for i, (w_l, w_r, b) in enumerate(params):
        ref = (a @ ref) @ w_l + b + ref @ w_r
        if i < len(params) - 1:
            ref = jnp.maximum(ref, 0.0)
    assert out.shape == (N, OUT_C)
    assert jnp.allclose(out, ref, atol=1e-4, rtol=1e-4)

    print("KERNEL_OK")
</pallas_src>

<mosaic_0001>
module attributes {stable_mosaic.version = 11 : i64} {
  func.func @_sage_mini_kernel(%arg0: memref<128x128xf32, #tpu.memory_space<vmem>>, %arg1: memref<128x128xf32, #tpu.memory_space<vmem>>, %arg2: memref<128x128xf32, #tpu.memory_space<vmem>>, %arg3: memref<128x128xf32, #tpu.memory_space<vmem>>, %arg4: memref<1x128xf32, #tpu.memory_space<vmem>>, %arg5: memref<128x128xf32, #tpu.memory_space<vmem>>, %arg6: memref<128x128xf32, #tpu.memory_space<vmem>>, %arg7: memref<1x128xf32, #tpu.memory_space<vmem>>, %arg8: memref<128x128xf32, #tpu.memory_space<vmem>>, %arg9: memref<128x128xf32, #tpu.memory_space<vmem>>, %arg10: memref<1x128xf32, #tpu.memory_space<vmem>>, %arg11: memref<128x128xf32, #tpu.memory_space<vmem>>) attributes {dimension_semantics = [], scalar_prefetch = 0 : i64, scratch_operands = 0 : i64, tpu.core_type = #tpu.core_type<tc>} {
    %c0 = arith.constant 0 : index
    %c0_0 = arith.constant 0 : index
    %0 = vector.load %arg0[%c0, %c0_0] : memref<128x128xf32, #tpu.memory_space<vmem>>, vector<128x128xf32>
    %c0_1 = arith.constant 0 : index
    %c0_2 = arith.constant 0 : index
    %1 = vector.load %arg1[%c0_1, %c0_2] : memref<128x128xf32, #tpu.memory_space<vmem>>, vector<128x128xf32>
    %c0_3 = arith.constant 0 : index
    %c0_4 = arith.constant 0 : index
    %2 = vector.load %arg2[%c0_3, %c0_4] : memref<128x128xf32, #tpu.memory_space<vmem>>, vector<128x128xf32>
    %c0_5 = arith.constant 0 : index
    %c0_6 = arith.constant 0 : index
    %3 = vector.load %arg3[%c0_5, %c0_6] : memref<128x128xf32, #tpu.memory_space<vmem>>, vector<128x128xf32>
    %c0_7 = arith.constant 0 : index
    %c0_8 = arith.constant 0 : index
    %4 = vector.load %arg4[%c0_7, %c0_8] : memref<1x128xf32, #tpu.memory_space<vmem>>, vector<1x128xf32>
    %cst = arith.constant dense<0.000000e+00> : vector<128x128xf32>
    %5 = tpu.matmul %1, %2, %cst {dimension_numbers = #tpu.dot_dimension_numbers<[1], [0], [0], [1], [0, 0, 1, 1], [], []>} : vector<128x128xf32>, vector<128x128xf32>, vector<128x128xf32> -> vector<128x128xf32>
    %cst_9 = arith.constant dense<0.000000e+00> : vector<128x128xf32>
    %6 = tpu.matmul %0, %5, %cst_9 {dimension_numbers = #tpu.dot_dimension_numbers<[1], [0], [0], [1], [0, 0, 1, 1], [], []>} : vector<128x128xf32>, vector<128x128xf32>, vector<128x128xf32> -> vector<128x128xf32>
    %cst_10 = arith.constant dense<0.000000e+00> : vector<128x128xf32>
    %7 = tpu.matmul %1, %3, %cst_10 {dimension_numbers = #tpu.dot_dimension_numbers<[1], [0], [0], [1], [0, 0, 1, 1], [], []>} : vector<128x128xf32>, vector<128x128xf32>, vector<128x128xf32> -> vector<128x128xf32>
    %8 = arith.addf %6, %7 : vector<128x128xf32>
    %9 = vector.broadcast %4 : vector<1x128xf32> to vector<128x128xf32>
    %10 = arith.addf %8, %9 : vector<128x128xf32>
    %cst_11 = arith.constant 0.000000e+00 : f32
    %11 = vector.broadcast %cst_11 : f32 to vector<128x128xf32>
    %12 = arith.maximumf %10, %11 : vector<128x128xf32>
    %c0_12 = arith.constant 0 : index
    %c0_13 = arith.constant 0 : index
    %13 = vector.load %arg5[%c0_12, %c0_13] : memref<128x128xf32, #tpu.memory_space<vmem>>, vector<128x128xf32>
    %c0_14 = arith.constant 0 : index
    %c0_15 = arith.constant 0 : index
    %14 = vector.load %arg6[%c0_14, %c0_15] : memref<128x128xf32, #tpu.memory_space<vmem>>, vector<128x128xf32>
    %c0_16 = arith.constant 0 : index
    %c0_17 = arith.constant 0 : index
    %15 = vector.load %arg7[%c0_16, %c0_17] : memref<1x128xf32, #tpu.memory_space<vmem>>, vector<1x128xf32>
    %cst_18 = arith.constant dense<0.000000e+00> : vector<128x128xf32>
    %16 = tpu.matmul %12, %13, %cst_18 {dimension_numbers = #tpu.dot_dimension_numbers<[1], [0], [0], [1], [0, 0, 1, 1], [], []>} : vector<128x128xf32>, vector<128x128xf32>, vector<128x128xf32> -> vector<128x128xf32>
    %cst_19 = arith.constant dense<0.000000e+00> : vector<128x128xf32>
    %17 = tpu.matmul %0, %16, %cst_19 {dimension_numbers = #tpu.dot_dimension_numbers<[1], [0], [0], [1], [0, 0, 1, 1], [], []>} : vector<128x128xf32>, vector<128x128xf32>, vector<128x128xf32> -> vector<128x128xf32>
    %cst_20 = arith.constant dense<0.000000e+00> : vector<128x128xf32>
    %18 = tpu.matmul %12, %14, %cst_20 {dimension_numbers = #tpu.dot_dimension_numbers<[1], [0], [0], [1], [0, 0, 1, 1], [], []>} : vector<128x128xf32>, vector<128x128xf32>, vector<128x128xf32> -> vector<128x128xf32>
    %19 = arith.addf %17, %18 : vector<128x128xf32>
    %20 = vector.broadcast %15 : vector<1x128xf32> to vector<128x128xf32>
    %21 = arith.addf %19, %20 : vector<128x128xf32>
    %cst_21 = arith.constant 0.000000e+00 : f32
    %22 = vector.broadcast %cst_21 : f32 to vector<128x128xf32>
    %23 = arith.maximumf %21, %22 : vector<128x128xf32>
    %c0_22 = arith.constant 0 : index
    %c0_23 = arith.constant 0 : index
    %24 = vector.load %arg8[%c0_22, %c0_23] : memref<128x128xf32, #tpu.memory_space<vmem>>, vector<128x128xf32>
    %c0_24 = arith.constant 0 : index
    %c0_25 = arith.constant 0 : index
    %25 = vector.load %arg9[%c0_24, %c0_25] : memref<128x128xf32, #tpu.memory_space<vmem>>, vector<128x128xf32>
    %c0_26 = arith.constant 0 : index
    %c0_27 = arith.constant 0 : index
    %26 = vector.load %arg10[%c0_26, %c0_27] : memref<1x128xf32, #tpu.memory_space<vmem>>, vector<1x128xf32>
    %cst_28 = arith.constant dense<0.000000e+00> : vector<128x128xf32>
    %27 = tpu.matmul %23, %24, %cst_28 {dimension_numbers = #tpu.dot_dimension_numbers<[1], [0], [0], [1], [0, 0, 1, 1], [], []>} : vector<128x128xf32>, vector<128x128xf32>, vector<128x128xf32> -> vector<128x128xf32>
    %cst_29 = arith.constant dense<0.000000e+00> : vector<128x128xf32>
    %28 = tpu.matmul %0, %27, %cst_29 {dimension_numbers = #tpu.dot_dimension_numbers<[1], [0], [0], [1], [0, 0, 1, 1], [], []>} : vector<128x128xf32>, vector<128x128xf32>, vector<128x128xf32> -> vector<128x128xf32>
    %cst_30 = arith.constant dense<0.000000e+00> : vector<128x128xf32>
    %29 = tpu.matmul %23, %25, %cst_30 {dimension_numbers = #tpu.dot_dimension_numbers<[1], [0], [0], [1], [0, 0, 1, 1], [], []>} : vector<128x128xf32>, vector<128x128xf32>, vector<128x128xf32> -> vector<128x128xf32>
    %30 = arith.addf %28, %29 : vector<128x128xf32>
    %31 = vector.broadcast %26 : vector<1x128xf32> to vector<128x128xf32>
    %32 = arith.addf %30, %31 : vector<128x128xf32>
    %c0_31 = arith.constant 0 : index
    %c0_32 = arith.constant 0 : index
    %33 = vector.load %arg11[%c0_31, %c0_32] : memref<128x128xf32, #tpu.memory_space<vmem>>, vector<128x128xf32>
    tpu.vector_store %arg11[%c0_31, %c0_32], %32 {strides = array<i32>} : memref<128x128xf32, #tpu.memory_space<vmem>>, vector<128x128xf32>,
    return
  }
}

</mosaic_0001>

<bundles_post_ra>
// kernel: forward.1
= control target key start
LH: loop header
LB: loop body
LE: loop exit
PB: predicated region body
PF: predicated region fallthrough
CT: control target
= control target key end

     0   :  { %16 = vsyncpa [#allocation3], 0  ;;  %s3104_s0 = inlined_call_operand.hbm [shape: f32[128,128], index: 0, kind: input, shape index: {}]   ;;  %s3105_s1 = inlined_call_operand.vmem [shape: f32[128,128], index: 1, kind: input, shape index: {}]   ;;  %s3106_s2 = inlined_call_operand.hbm [shape: f32[128,128], index: 2, kind: input, shape index: {}]   ;;  %s3107_s3 = inlined_call_operand.hbm [shape: f32[128,128], index: 3, kind: input, shape index: {}]   ;;  %s3108_s4 = inlined_call_operand.vmem [shape: f32[1,128], index: 4, kind: input, shape index: {}, may-alias: {4,7,10}]   ;;  %s3109_s5 = inlined_call_operand.hbm [shape: f32[128,128], index: 5, kind: input, shape index: {}]   ;;  %s3110_s6 = inlined_call_operand.hbm [shape: f32[128,128], index: 6, kind: input, shape index: {}]   ;;  %s3111_s7 = inlined_call_operand.vmem [shape: f32[1,128], index: 7, kind: input, shape index: {}, may-alias: {4,7,10}]   ;;  %s3112_s8 = inlined_call_operand.vmem [shape: f32[128,128], index: 8, kind: input, shape index: {}]   ;;  %s3113_s9 = inlined_call_operand.vmem [shape: f32[128,128], index: 9, kind: input, shape index: {}]   ;;  %s3114_s10 = inlined_call_operand.vmem [shape: f32[1,128], index: 10, kind: input, shape index: {}, may-alias: {4,7,10}]   ;;  %s3115_s11 = inlined_call_operand.vmem [shape: f32[128,128], index: 11, kind: output, shape index: {}]  }
   0x1   :  { %17 = vsyncpa [#allocation5], 0 }
   0x2   :  { %18 = vsyncpa [#allocation8], 0  ;;  %s2618_s17 = smov [#allocation4]   ;;  %s2619_s19 = smov [#allocation7]  }
   0x3   :  { %s38_s18 = sshll.u32 %s2618_s17, 4  ;;  %s64_s20 = sshll.u32 %s2619_s19, 4  ;;  %s39_s18 = int_to_ptr.vmem [resolvable:$true] %s38_s18  ;;  %s65_s20 = int_to_ptr.vmem [resolvable:$true] %s64_s20 }
   0x4   :  { %s2520_s21 = scalar_lea.vmem %s39_s18, 2048  ;;  %p2525_p1 = scmp.lt.s32.totalorder %s39_s18, %s39_s18 }
   0x5   :  { %p2521_p0 = scmp.ne.s32.totalorder %s39_s18, %s2520_s21  ;;  %p2526_p2 = scmp.lt.s32.totalorder %s2520_s21, %s2520_s21 }
   0x7   :  { %p2527_p3 = por %p2526_p2, %p2525_p1 }
   0x9   :  { %p2528_p4 = pnand %p2527_p3, %p2521_p0 }
   0xb   :  { %2531 = shalt.err (!%p2528_p4)
}
   0xc   :  { %s2620_s22 = smov 128   ;;  %s2621_s23 = smov 8  }
   0xd   :  { %44 = dma.hbm_to_vmem [thread:$0]  %s3106_s2, 2048, %s39_s18, [#allocation5], %s2620_s22, %s2620_s22, %s2621_s23  }
   0xe   :  { %s2540_s26 = scalar_lea.vmem %s65_s20, 2048  ;;  %p2545_p6 = scmp.lt.s32.totalorder %s65_s20, %s65_s20 }
   0xf   :  { %p2541_p5 = scmp.ne.s32.totalorder %s65_s20, %s2540_s26  ;;  %p2546_p7 = scmp.lt.s32.totalorder %s2540_s26, %s2540_s26 }
  0x11   :  { %p2547_p8 = por %p2546_p7, %p2545_p6 }
  0x13   :  { %p2548_p9 = pnand %p2547_p8, %p2541_p5 }
  0x15   :  { %2551 = shalt.err (!%p2548_p9)
}
  0x16   :  { %70 = dma.hbm_to_vmem [thread:$0]  %s3109_s5, 2048, %s65_s20, [#allocation8], %s2620_s22, %s2620_s22, %s2621_s23  }
  0x17   :  { %s2622_s29 = smov [#allocation2]   ;;  %s2623_s12 = smov [#allocation6]  }
  0x18   :  { %s24_s30 = sshll.u32 %s2622_s29, 4  ;;  %s50_s13 = sshll.u32 %s2623_s12, 4  ;;  %s25_s30 = int_to_ptr.vmem [resolvable:$true] %s24_s30  ;;  %s51_s13 = int_to_ptr.vmem [resolvable:$true] %s50_s13 }
  0x19   :  { %s2560_s2 = scalar_lea.vmem %s25_s30, 2048  ;;  %p2565_p11 = scmp.lt.s32.totalorder %s25_s30, %s25_s30 }
  0x1a   :  { %p2561_p10 = scmp.ne.s32.totalorder %s25_s30, %s2560_s2  ;;  %p2566_p12 = scmp.lt.s32.totalorder %s2560_s2, %s2560_s2 }
  0x1c   :  { %p2567_p13 = por %p2566_p12, %p2565_p11 }
  0x1e   :  { %p2568_p0 = pnand %p2567_p13, %p2561_p10 }
  0x20   :  { %2571 = shalt.err (!%p2568_p0)
}
  0x21   :  { %30 = dma.hbm_to_vmem [thread:$0]  %s3104_s0, 2048, %s25_s30, [#allocation3], %s2620_s22, %s2620_s22, %s2621_s23  }
  0x22   :  { %s2580_s5 = scalar_lea.vmem %s51_s13, 2048  ;;  %p2585_p2 = scmp.lt.s32.totalorder %s51_s13, %s51_s13 }
  0x23   :  { %p2581_p1 = scmp.ne.s32.totalorder %s51_s13, %s2580_s5  ;;  %p2586_p3 = scmp.lt.s32.totalorder %s2580_s5, %s2580_s5 }
  0x25   :  { %p2587_p4 = por %p2586_p3, %p2585_p2 }
  0x27   :  { %p2588_p5 = pnand %p2587_p4, %p2581_p1 }
  0x29   :  { %2591 = shalt.err (!%p2588_p5)
}
  0x2a   :  { %56 = dma.hbm_to_vmem [thread:$0]  %s3107_s3, 2048, %s51_s13, [#allocation5], %s2620_s22, %s2620_s22, %s2621_s23  }
  0x2b   :  { %s2624_s18 = smov [#allocation9]  }
  0x2c   :  { %s76_s19 = sshll.u32 %s2624_s18, 4  ;;  %s77_s19 = int_to_ptr.vmem [resolvable:$true] %s76_s19 }
  0x2d   :  { %s2600_s20 = scalar_lea.vmem %s77_s19, 2048  ;;  %p2605_p7 = scmp.lt.s32.totalorder %s77_s19, %s77_s19 }
  0x2e   :  { %p2601_p6 = scmp.ne.s32.totalorder %s77_s19, %s2600_s20  ;;  %p2606_p8 = scmp.lt.s32.totalorder %s2600_s20, %s2600_s20 }
  0x30   :  { %p2607_p9 = por %p2606_p8, %p2605_p7 }
  0x32   :  { %p2608_p10 = pnand %p2607_p9, %p2601_p6 }
  0x34   :  { %2611 = shalt.err (!%p2608_p10)
}
  0x35   :  { %82 = dma.hbm_to_vmem [thread:$0]  %s3110_s6, 2048, %s77_s19, [#allocation8], %s2620_s22, %s2620_s22, %s2621_s23  }
  0x36   :  { %2612 = dma.done.wait [#allocation3], 2048  }
  0x37   :  { %2613 = vsyncadd [#allocation3], 4294965248 }
  0x38   :  { %2614 = dma.done.wait [#allocation5], 4096  }
  0x39   :  { %2615 = vsyncadd [#allocation5], 4294963200 }
  0x3a   :  { %2616 = dma.done.wait [#allocation8], 4096  }
  0x3b   :  { %2617 = vsyncadd [#allocation8], 4294963200  ;;  %v153_v0 = vld [vmem:[#allocation4 + $0x78] sm:$0xff]  ;;  %v152_v1 = vld [vmem:[#allocation4 + $0x70] sm:$0xff] }
  0x3c   :  { %1954 = vmatprep.subr.mxu0 %v153_v0  ;;  %v151_v2 = vld [vmem:[#allocation4 + $0x68] sm:$0xff]  ;;  %v150_v3 = vld [vmem:[#allocation4 + $0x60] sm:$0xff]  ;;  %v149_v5 = vld [vmem:[#allocation4 + $0x58] sm:$0xff] }
  0x3d   :  { %1955 = vmatpush3.msra.mxu0 %v153_v0  ;;  %v122_v4 = vld [vmem:[%s3105_s1] sm:$0xff]  ;;  %v148_v6 = vld [vmem:[#allocation4 + $0x50] sm:$0xff]  ;;  %v147_v7 = vld [vmem:[#allocation4 + $0x48] sm:$0xff] }
  0x3e   :  { %1956 = vmatprep.subr.mxu0 %v152_v1  ;;  %1986 = vmatprep.mubr.f32.mxu0 %v122_v4  ;;  %v146_v8 = vld [vmem:[#allocation4 + $0x40] sm:$0xff]  ;;  %v145_v9 = vld [vmem:[#allocation4 + $0x38] sm:$0xff]  ;;  %v144_v10 = vld [vmem:[#allocation4 + $0x30] sm:$0xff] }
  0x3f   :  { %1957 = vmatpush3.msra.mxu0 %v152_v1  ;;  %2042 = vmatprep.mubr.f32.mxu1 %v122_v4  ;;  %v143_v11 = vld [vmem:[#allocation4 + $0x28] sm:$0xff]  ;;  %v142_v12 = vld [vmem:[#allocation4 + $0x20] sm:$0xff]  ;;  %v141_v13 = vld [vmem:[#allocation4 + $0x18] sm:$0xff] }
  0x40   :  { %1958 = vmatprep.subr.mxu0 %v151_v2  ;;  %v140_v14 = vld [vmem:[#allocation4 + $0x10] sm:$0xff]  ;;  %v139_v15 = vld [vmem:[#allocation4 + $0x8] sm:$0xff]  ;;  %v138_v16 = vld [vmem:[#allocation4] sm:$0xff] }
  0x41   :  { %1959 = vmatpush3.msra.mxu0 %v151_v2  ;;  %v2721_v17 = vld [vmem:[%s3105_s1 + $0x8] sm:$0xff]  ;;  %v2726_v18 = vld [vmem:[%s3105_s1 + $0x10] sm:$0xff]  ;;  %v2733_v19 = vld [vmem:[%s3105_s1 + $0x18] sm:$0xff] }
  0x42   :  { %1960 = vmatprep.subr.mxu0 %v150_v3  ;;  %v2738_v20 = vld [vmem:[%s3105_s1 + $0x20] sm:$0xff]  ;;  %v2745_v21 = vld [vmem:[%s3105_s1 + $0x28] sm:$0xff]  ;;  %v2750_v22 = vld [vmem:[%s3105_s1 + $0x30] sm:$0xff] }
  0x43   :  { %1961 = vmatpush3.msra.mxu0 %v150_v3  ;;  %v2757_v23 = vld [vmem:[%s3105_s1 + $0x38] sm:$0xff]  ;;  %v2762_v24 = vld [vmem:[%s3105_s1 + $0x40] sm:$0xff]  ;;  %v2769_v25 = vld [vmem:[%s3105_s1 + $0x48] sm:$0xff] }
  0x44   :  { %1962 = vmatprep.subr.mxu0 %v149_v5  ;;  %v2774_v26 = vld [vmem:[%s3105_s1 + $0x50] sm:$0xff]  ;;  %v2781_v27 = vld [vmem:[%s3105_s1 + $0x58] sm:$0xff]  ;;  %v2786_v28 = vld [vmem:[%s3105_s1 + $0x60] sm:$0xff] }
  0x45   :  { %1963 = vmatpush3.msra.mxu0 %v149_v5  ;;  %v2793_v29 = vld [vmem:[%s3105_s1 + $0x68] sm:$0xff]  ;;  %v2798_v30 = vld [vmem:[%s3105_s1 + $0x70] sm:$0xff]  ;;  %v2805_v31 = vld [vmem:[%s3105_s1 + $0x78] sm:$0xff] }
  0x46   :  { %1964 = vmatprep.subr.mxu0 %v148_v6  ;;  %v169_v32 = vld [vmem:[#allocation6 + $0x78] sm:$0xff]  ;;  %v168_v33 = vld [vmem:[#allocation6 + $0x70] sm:$0xff]  ;;  %v167_v34 = vld [vmem:[#allocation6 + $0x68] sm:$0xff] }
  0x47   :  { %1965 = vmatpush3.msra.mxu0 %v148_v6  ;;  %2010 = vmatprep.subr.mxu1 %v169_v32  ;;  %v166_v35 = vld [vmem:[#allocation6 + $0x60] sm:$0xff]  ;;  %v165_v36 = vld [vmem:[#allocation6 + $0x58] sm:$0xff]  ;;  %v164_v37 = vld [vmem:[#allocation6 + $0x50] sm:$0xff] }
  0x48   :  { %1966 = vmatprep.subr.mxu0 %v147_v7  ;;  %2011 = vmatpush3.msra.mxu1 %v169_v32  ;;  %v163_v38 = vld [vmem:[#allocation6 + $0x48] sm:$0xff]  ;;  %v162_v39 = vld [vmem:[#allocation6 + $0x40] sm:$0xff]  ;;  %v161_v40 = vld [vmem:[#allocation6 + $0x38] sm:$0xff] }
  0x49   :  { %1967 = vmatpush3.msra.mxu0 %v147_v7  ;;  %2012 = vmatprep.subr.mxu1 %v168_v33  ;;  %v160_v41 = vld [vmem:[#allocation6 + $0x30] sm:$0xff]  ;;  %v159_v42 = vld [vmem:[#allocation6 + $0x28] sm:$0xff]  ;;  %v158_v43 = vld [vmem:[#allocation6 + $0x20] sm:$0xff] }
  0x4a   :  { %1968 = vmatprep.subr.mxu0 %v146_v8  ;;  %2013 = vmatpush3.msra.mxu1 %v168_v33  ;;  %v157_v44 = vld [vmem:[#allocation6 + $0x18] sm:$0xff]  ;;  %v156_v45 = vld [vmem:[#allocation6 + $0x10] sm:$0xff]  ;;  %v155_v46 = vld [vmem:[#allocation6 + $0x8] sm:$0xff] }
  0x4b   :  { %1969 = vmatpush3.msra.mxu0 %v146_v8  ;;  %2014 = vmatprep.subr.mxu1 %v167_v34  ;;  %v154_v47 = vld [vmem:[#allocation6] sm:$0xff]  ;;  %v659_v49 = vld [vmem:[#allocation7 + $0x78] sm:$0xff]  ;;  %v658_v50 = vld [vmem:[#allocation7 + $0x70] sm:$0xff] }
  0x4c   :  { %1970 = vmatprep.subr.mxu0 %v145_v9  ;;  %2015 = vmatpush3.msra.mxu1 %v167_v34  ;;  %v2809_v48 = vld [vmem:[#allocation2] sm:$0xff]  ;;  %v657_v51 = vld [vmem:[#allocation7 + $0x68] sm:$0xff]  ;;  %v655_v53 = vld [vmem:[#allocation7 + $0x58] sm:$0xff] }
  0x4d   :  { %1971 = vmatpush3.msra.mxu0 %v145_v9  ;;  %2016 = vmatprep.subr.mxu1 %v166_v35  ;;  %v656_v52 = vld [vmem:[#allocation7 + $0x60] sm:$0xff]  ;;  %v654_v54 = vld [vmem:[#allocation7 + $0x50] sm:$0xff]  ;;  %v653_v55 = vld [vmem:[#allocation7 + $0x48] sm:$0xff] }
  0x4e   :  { %1972 = vmatprep.subr.mxu0 %v144_v10  ;;  %2017 = vmatpush3.msra.mxu1 %v166_v35  ;;  %v652_v56 = vld [vmem:[#allocation7 + $0x40] sm:$0xff]  ;;  %v651_v57 = vld [vmem:[#allocation7 + $0x38] sm:$0xff]  ;;  %v650_v58 = vld [vmem:[#allocation7 + $0x30] sm:$0xff] }
  0x4f   :  { %1973 = vmatpush3.msra.mxu0 %v144_v10  ;;  %2018 = vmatprep.subr.mxu1 %v165_v36  ;;  %v649_v59 = vld [vmem:[#allocation7 + $0x28] sm:$0xff]  ;;  %v2856_v32 = vld [vmem:[#allocation2 + $0x58] sm:$0xff]  ;;  %v2858_v34 = vld [vmem:[#allocation2 + $0x60] sm:$0xff] }
  0x50   :  { %1974 = vmatprep.subr.mxu0 %v143_v11  ;;  %2019 = vmatpush3.msra.mxu1 %v165_v36  ;;  %v665_v33 = vld [vmem:[#allocation9 + $0x28] sm:$0xff]  ;;  %v2864_v36 = vld [vmem:[#allocation2 + $0x70] sm:$0xff] }
  0x51   :  { %1975 = vmatpush3.msra.mxu0 %v143_v11  ;;  %2020 = vmatprep.subr.mxu1 %v164_v37  ;;  %v2862_v35 = vld [vmem:[#allocation2 + $0x68] sm:$0xff] }
  0x52   :  { %1976 = vmatprep.subr.mxu0 %v142_v12  ;;  %2021 = vmatpush3.msra.mxu1 %v164_v37  ;;  %v2868_v37 = vld [vmem:[#allocation2 + $0x78] sm:$0xff] }
  0x53   :  { %1977 = vmatpush3.msra.mxu0 %v142_v12  ;;  %2022 = vmatprep.subr.mxu1 %v163_v38  ;;  %v2826_v12 = vld [vmem:[#allocation2 + $0x8] sm:$0xff] }
  0x54   :  { %1978 = vmatprep.subr.mxu0 %v141_v13  ;;  %2023 = vmatpush3.msra.mxu1 %v163_v38  ;;  %v648_v38 = vld [vmem:[#allocation7 + $0x20] sm:$0xff] }
  0x55   :  { %1979 = vmatpush3.msra.mxu0 %v141_v13  ;;  %2024 = vmatprep.subr.mxu1 %v162_v39  ;;  %v675_v13 = vld [vmem:[#allocation9 + $0x78] sm:$0xff] }
  0x56   :  { %1980 = vmatprep.subr.mxu0 %v140_v14  ;;  %2025 = vmatpush3.msra.mxu1 %v162_v39  ;;  %v664_v39 = vld [vmem:[#allocation9 + $0x20] sm:$0xff] }
  0x57   :  { %1981 = vmatpush3.msra.mxu0 %v140_v14  ;;  %2026 = vmatprep.subr.mxu1 %v161_v40  ;;  %v2828_v14 = vld [vmem:[#allocation2 + $0x10] sm:$0xff] }
  0x58   :  { %1982 = vmatprep.subr.mxu0 %v139_v15  ;;  %2027 = vmatpush3.msra.mxu1 %v161_v40  ;;  %v647_v40 = vld [vmem:[#allocation7 + $0x18] sm:$0xff] }
  0x59   :  { %1983 = vmatpush3.msra.mxu0 %v139_v15  ;;  %2028 = vmatprep.subr.mxu1 %v160_v41  ;;  %v674_v15 = vld [vmem:[#allocation9 + $0x70] sm:$0xff] }
  0x5a   :  { %1984 = vmatprep.subr.mxu0 %v138_v16  ;;  %2029 = vmatpush3.msra.mxu1 %v160_v41  ;;  %v663_v41 = vld [vmem:[#allocation9 + $0x18] sm:$0xff] }
  0x5b   :  { %1985 = vmatpush3.msra.mxu0 %v138_v16  ;;  %2030 = vmatprep.subr.mxu1 %v159_v42  ;;  %v2832_v16 = vld [vmem:[#allocation2 + $0x18] sm:$0xff] }
  0x5c   :  { %1987 = vmatmul.mubr.f32.vlgmr.msra.gmra.mxu0 %v2721_v17  ;;  %2031 = vmatpush3.msra.mxu1 %v159_v42  ;;  %v646_v42 = vld [vmem:[#allocation7 + $0x10] sm:$0xff] }
  0x5d   :  { %1989 = vmatprep.mubr.f32.mxu0 %v2726_v18  ;;  %2032 = vmatprep.subr.mxu1 %v158_v43 }
  0x5e   :  { %2033 = vmatpush3.msra.mxu1 %v158_v43  ;;  %v662_v43 = vld [vmem:[#allocation9 + $0x10] sm:$0xff] }
  0x5f   :  { %2034 = vmatprep.subr.mxu1 %v157_v44 }
  0x60   :  { %1990 = vmatmul.mubr.f32.gmra.mxu0 %v2733_v19  ;;  %2035 = vmatpush3.msra.mxu1 %v157_v44  ;;  %v645_v44 = vld [vmem:[#allocation7 + $0x8] sm:$0xff] }
  0x61   :  { %1992 = vmatprep.mubr.f32.mxu0 %v2738_v20  ;;  %2036 = vmatprep.subr.mxu1 %v156_v45 }
  0x62   :  { %2037 = vmatpush3.msra.mxu1 %v156_v45  ;;  %v661_v45 = vld [vmem:[#allocation9 + $0x8] sm:$0xff] }
  0x63   :  { %2038 = vmatprep.subr.mxu1 %v155_v46 }
  0x64   :  { %1993 = vmatmul.mubr.f32.gmra.mxu0 %v2745_v21  ;;  %2039 = vmatpush3.msra.mxu1 %v155_v46  ;;  %v644_v46 = vld [vmem:[#allocation7] sm:$0xff] }
  0x65   :  { %1995 = vmatprep.mubr.f32.mxu0 %v2750_v22  ;;  %2040 = vmatprep.subr.mxu1 %v154_v47 }
  0x66   :  { %2041 = vmatpush3.msra.mxu1 %v154_v47  ;;  %v660_v47 = vld [vmem:[#allocation9] sm:$0xff] }
  0x67   :  { %2043 = vmatmul.mubr.f32.vlgmr.msra.gmra.mxu1 %v2721_v17  ;;  %2122 = vmatprep.subr.mxu1 %v659_v49  ;;  %v673_v17 = vld [vmem:[#allocation9 + $0x68] sm:$0xff] }
  0x68   :  { %1996 = vmatmul.mubr.f32.gmra.mxu0 %v2757_v23  ;;  %2045 = vmatprep.mubr.f32.mxu1 %v2726_v18  ;;  %v2834_v18 = vld [vmem:[#allocation2 + $0x20] sm:$0xff] }
  0x69   :  { %1998 = vmatprep.mubr.f32.mxu0 %v2762_v24  ;;  %2123 = vmatpush3.msra.mxu1 %v659_v49 }
  0x6a   :  { %2124 = vmatprep.subr.mxu1 %v658_v50 }
  0x6b   :  { %2046 = vmatmul.mubr.f32.gmra.mxu1 %v2733_v19  ;;  %v672_v19 = vld [vmem:[#allocation9 + $0x60] sm:$0xff] }
  0x6c   :  { %1999 = vmatmul.mubr.f32.gmra.mxu0 %v2769_v25  ;;  %2048 = vmatprep.mubr.f32.mxu1 %v2738_v20  ;;  %v2838_v20 = vld [vmem:[#allocation2 + $0x28] sm:$0xff] }
  0x6d   :  { %2001 = vmatprep.mubr.f32.mxu0 %v2774_v26  ;;  %2125 = vmatpush3.msra.mxu1 %v658_v50 }
  0x6e   :  { %2126 = vmatprep.subr.mxu1 %v657_v51 }
  0x6f   :  { %2049 = vmatmul.mubr.f32.gmra.mxu1 %v2745_v21  ;;  %v671_v21 = vld [vmem:[#allocation9 + $0x58] sm:$0xff] }
  0x70   :  { %2002 = vmatmul.mubr.f32.gmra.mxu0 %v2781_v27  ;;  %2051 = vmatprep.mubr.f32.mxu1 %v2750_v22  ;;  %v2840_v22 = vld [vmem:[#allocation2 + $0x30] sm:$0xff] }
  0x71   :  { %2004 = vmatprep.mubr.f32.mxu0 %v2786_v28  ;;  %2127 = vmatpush3.msra.mxu1 %v657_v51 }
  0x72   :  { %2128 = vmatprep.subr.mxu1 %v656_v52 }
  0x73   :  { %2052 = vmatmul.mubr.f32.gmra.mxu1 %v2757_v23  ;;  %v670_v23 = vld [vmem:[#allocation9 + $0x50] sm:$0xff] }
  0x74   :  { %2005 = vmatmul.mubr.f32.gmra.mxu0 %v2793_v29  ;;  %2054 = vmatprep.mubr.f32.mxu1 %v2762_v24  ;;  %v2844_v24 = vld [vmem:[#allocation2 + $0x38] sm:$0xff] }
  0x75   :  { %2007 = vmatprep.mubr.f32.mxu0 %v2798_v30  ;;  %2129 = vmatpush3.msra.mxu1 %v656_v52 }
  0x76   :  { %2130 = vmatprep.subr.mxu1 %v655_v53 }
  0x77   :  { %2055 = vmatmul.mubr.f32.gmra.mxu1 %v2769_v25  ;;  %v669_v25 = vld [vmem:[#allocation9 + $0x48] sm:$0xff] }
  0x78   :  { %2008 = vmatmul.mubr.f32.gmra.mxu0 %v2805_v31  ;;  %2057 = vmatprep.mubr.f32.mxu1 %v2774_v26  ;;  %v2846_v26 = vld [vmem:[#allocation2 + $0x40] sm:$0xff] }
  0x79   :  { %2098 = vmatprep.mubr.f32.mxu0 %v2809_v48  ;;  %2131 = vmatpush3.msra.mxu1 %v655_v53 }
  0x7a   :  { %2132 = vmatprep.subr.mxu1 %v654_v54 }
  0x7b   :  { %2058 = vmatmul.mubr.f32.gmra.mxu1 %v2781_v27  ;;  %v668_v27 = vld [vmem:[#allocation9 + $0x40] sm:$0xff] }
  0x7c   :  { %2060 = vmatprep.mubr.f32.mxu1 %v2786_v28  ;;  %2133 = vmatpush3.msra.mxu1 %v654_v54  ;;  %v2850_v28 = vld [vmem:[#allocation2 + $0x48] sm:$0xff] }
  0x7d   :  { %2134 = vmatprep.subr.mxu1 %v653_v55 }
  0x7e   :  { %2135 = vmatpush3.msra.mxu1 %v653_v55 }
  0x7f   :  { %2061 = vmatmul.mubr.f32.gmra.mxu1 %v2793_v29  ;;  %2136 = vmatprep.subr.mxu1 %v652_v56  ;;  %v667_v29 = vld [vmem:[#allocation9 + $0x38] sm:$0xff] }
  0x80   :  { %2063 = vmatprep.mubr.f32.mxu1 %v2798_v30  ;;  %2137 = vmatpush3.msra.mxu1 %v652_v56  ;;  %v2852_v30 = vld [vmem:[#allocation2 + $0x50] sm:$0xff] }
  0x81   :  { %2138 = vmatprep.subr.mxu1 %v651_v57 }
  0x82   :  { %2139 = vmatpush3.msra.mxu1 %v651_v57 }
  0x83   :  { %2064 = vmatmul.mubr.f32.gmra.mxu1 %v2805_v31  ;;  %2140 = vmatprep.subr.mxu1 %v650_v58  ;;  %v666_v31 = vld [vmem:[#allocation9 + $0x30] sm:$0xff] }
  0x84   :  { %2141 = vmatpush3.msra.mxu1 %v650_v58  ;;  %v2874_v58 = vld [vmem:[%s3108_s4] ss:$0 sm:$0xff] }
  0x85   :  { %2142 = vmatprep.subr.mxu1 %v649_v59 }
  0x86   :  { %2143 = vmatpush3.msra.mxu1 %v649_v59 }
  0x87   :  { %2144 = vmatprep.subr.mxu1 %v648_v38 }
  0x88   :  { %2145 = vmatpush3.msra.mxu1 %v648_v38 }
  0x89   :  { %2146 = vmatprep.subr.mxu1 %v647_v40 }
  0x8a   :  { %2147 = vmatpush3.msra.mxu1 %v647_v40 }
  0x8b   :  { %2148 = vmatprep.subr.mxu1 %v646_v42 }
  0x8c   :  { %2149 = vmatpush3.msra.mxu1 %v646_v42 }
  0x8d   :  { %2150 = vmatprep.subr.mxu1 %v645_v44 }
  0x8e   :  { %2151 = vmatpush3.msra.mxu1 %v645_v44 }
  0x8f   :  { %2152 = vmatprep.subr.mxu1 %v644_v46 }
  0x90   :  { %2153 = vmatpush3.msra.mxu1 %v644_v46 }
 0x11c   :  { %v1988_v60 = vpop.f32.mrf.mxu0 }
 0x11e   :  { %v237_v61 = vpop.f32.mrf.mxu0 }
 0x120   :  { %v1991_v62 = vpop.f32.mrf.mxu0 }
 0x122   :  { %v247_v63 = vpop.f32.mrf.mxu0 }
 0x124   :  { %v1994_v0 = vpop.f32.mrf.mxu0 }
 0x126   :  { %v257_v1 = vpop.f32.mrf.mxu0 }
 0x127   :  { %v2044_v49 = vpop.f32.mrf.mxu1 }
 0x128   :  { %v1997_v2 = vpop.f32.mrf.mxu0 }
 0x129   :  { %v382_v50 = vpop.f32.mrf.mxu1 }
 0x12a   :  { %v267_v3 = vpop.f32.mrf.mxu0 }
 0x12b   :  { %v2047_v51 = vpop.f32.mrf.mxu1 }
 0x12c   :  { %v2000_v4 = vpop.f32.mrf.mxu0 }
 0x12d   :  { %v392_v52 = vpop.f32.mrf.mxu1 }
 0x12e   :  { %v277_v5 = vpop.f32.mrf.mxu0 }
 0x12f   :  { %v2050_v53 = vpop.f32.mrf.mxu1 }
 0x130   :  { %v2003_v6 = vpop.f32.mrf.mxu0 }
 0x131   :  { %v402_v54 = vpop.f32.mrf.mxu1 }
 0x132   :  { %v287_v7 = vpop.f32.mrf.mxu0 }
 0x133   :  { %v2053_v55 = vpop.f32.mrf.mxu1 }
 0x134   :  { %v2006_v8 = vpop.f32.mrf.mxu0 }
 0x135   :  { %v412_v56 = vpop.f32.mrf.mxu1 }
 0x136   :  { %v297_v9 = vpop.f32.mrf.mxu0 }
 0x138   :  { %v2009_v10 = vpop.f32.mrf.mxu0 }
 0x139   :  { %2066 = vmatprep.subr.mxu0 %v2009_v10 }
 0x13a   :  { %v307_v11 = vpop.f32.mrf.mxu0  ;;  %2067 = vmatpush3.msra.mxu0 %v2009_v10 }
 0x13b   :  { %2068 = vmatprep.subr.mxu0 %v307_v11 }
 0x13c   :  { %2069 = vmatpush3.msra.mxu0 %v307_v11 }
 0x13d   :  { %2070 = vmatprep.subr.mxu0 %v2006_v8 }
 0x13e   :  { %2071 = vmatpush3.msra.mxu0 %v2006_v8 }
 0x13f   :  { %2072 = vmatprep.subr.mxu0 %v297_v9 }
 0x140   :  { %2073 = vmatpush3.msra.mxu0 %v297_v9 }
 0x141   :  { %2074 = vmatprep.subr.mxu0 %v2003_v6 }
 0x142   :  { %2075 = vmatpush3.msra.mxu0 %v2003_v6 }
 0x143   :  { %2076 = vmatprep.subr.mxu0 %v287_v7 }
 0x144   :  { %2077 = vmatpush3.msra.mxu0 %v287_v7 }
 0x145   :  { %2078 = vmatprep.subr.mxu0 %v2000_v4 }
 0x146   :  { %2079 = vmatpush3.msra.mxu0 %v2000_v4 }
 0x147   :  { %2080 = vmatprep.subr.mxu0 %v277_v5 }
 0x148   :  { %2081 = vmatpush3.msra.mxu0 %v277_v5 }
 0x149   :  { %2082 = vmatprep.subr.mxu0 %v1997_v2 }
 0x14a   :  { %2083 = vmatpush3.msra.mxu0 %v1997_v2 }
 0x14b   :  { %2084 = vmatprep.subr.mxu0 %v267_v3 }
 0x14c   :  { %2085 = vmatpush3.msra.mxu0 %v267_v3 }
 0x14d   :  { %2086 = vmatprep.subr.mxu0 %v1994_v0 }
 0x14e   :  { %2087 = vmatpush3.msra.mxu0 %v1994_v0 }
 0x14f   :  { %2088 = vmatprep.subr.mxu0 %v257_v1 }
 0x150   :  { %2089 = vmatpush3.msra.mxu0 %v257_v1 }
 0x151   :  { %2090 = vmatprep.subr.mxu0 %v1991_v62 }
 0x152   :  { %2091 = vmatpush3.msra.mxu0 %v1991_v62 }
 0x153   :  { %2092 = vmatprep.subr.mxu0 %v247_v63 }
 0x154   :  { %2093 = vmatpush3.msra.mxu0 %v247_v63 }
 0x155   :  { %2094 = vmatprep.subr.mxu0 %v1988_v60 }
 0x156   :  { %2095 = vmatpush3.msra.mxu0 %v1988_v60 }
 0x157   :  { %2096 = vmatprep.subr.mxu0 %v237_v61 }
 0x158   :  { %2097 = vmatpush3.msra.mxu0 %v237_v61  ;;  %v2056_v61 = vpop.f32.mrf.mxu1 }
 0x159   :  { %2099 = vmatmul.mubr.f32.vlgmr.msra.gmra.mxu0 %v2826_v12  ;;  %2178 = vmatprep.subr.mxu0 %v675_v13 }
 0x15a   :  { %2101 = vmatprep.mubr.f32.mxu0 %v2828_v14  ;;  %2179 = vmatpush3.msra.mxu0 %v675_v13  ;;  %v422_v4 = vpop.f32.mrf.mxu1 }
 0x15b   :  { %2180 = vmatprep.subr.mxu0 %v674_v15 }
 0x15c   :  { %2181 = vmatpush3.msra.mxu0 %v674_v15  ;;  %v2059_v15 = vpop.f32.mrf.mxu1 }
 0x15d   :  { %2102 = vmatmul.mubr.f32.gmra.mxu0 %v2832_v16  ;;  %2182 = vmatprep.subr.mxu0 %v673_v17 }
 0x15e   :  { %2104 = vmatprep.mubr.f32.mxu0 %v2834_v18  ;;  %2183 = vmatpush3.msra.mxu0 %v673_v17 }
 0x15f   :  { %2184 = vmatprep.subr.mxu0 %v672_v19 }
 0x160   :  { %2185 = vmatpush3.msra.mxu0 %v672_v19 }
 0x161   :  { %2105 = vmatmul.mubr.f32.gmra.mxu0 %v2838_v20  ;;  %2186 = vmatprep.subr.mxu0 %v671_v21 }
 0x162   :  { %2107 = vmatprep.mubr.f32.mxu0 %v2840_v22  ;;  %2187 = vmatpush3.msra.mxu0 %v671_v21 }
 0x163   :  { %2188 = vmatprep.subr.mxu0 %v670_v23 }
 0x164   :  { %2189 = vmatpush3.msra.mxu0 %v670_v23 }
 0x165   :  { %2108 = vmatmul.mubr.f32.gmra.mxu0 %v2844_v24  ;;  %2190 = vmatprep.subr.mxu0 %v669_v25 }
 0x166   :  { %2110 = vmatprep.mubr.f32.mxu0 %v2846_v26  ;;  %2191 = vmatpush3.msra.mxu0 %v669_v25 }
 0x167   :  { %2192 = vmatprep.subr.mxu0 %v668_v27 }
 0x168   :  { %2193 = vmatpush3.msra.mxu0 %v668_v27 }
 0x169   :  { %2111 = vmatmul.mubr.f32.gmra.mxu0 %v2850_v28  ;;  %2194 = vmatprep.subr.mxu0 %v667_v29 }
 0x16a   :  { %2113 = vmatprep.mubr.f32.mxu0 %v2852_v30  ;;  %2195 = vmatpush3.msra.mxu0 %v667_v29 }
 0x16b   :  { %2196 = vmatprep.subr.mxu0 %v666_v31 }
 0x16c   :  { %2197 = vmatpush3.msra.mxu0 %v666_v31 }
 0x16d   :  { %2114 = vmatmul.mubr.f32.gmra.mxu0 %v2856_v32  ;;  %2198 = vmatprep.subr.mxu0 %v665_v33 }
 0x16e   :  { %2116 = vmatprep.mubr.f32.mxu0 %v2858_v34  ;;  %2199 = vmatpush3.msra.mxu0 %v665_v33  ;;  %v432_v33 = vpop.f32.mrf.mxu1 }
 0x16f   :  { %2200 = vmatprep.subr.mxu0 %v664_v39 }
 0x170   :  { %2201 = vmatpush3.msra.mxu0 %v664_v39  ;;  %v2062_v46 = vpop.f32.mrf.mxu1 }
 0x171   :  { %2117 = vmatmul.mubr.f32.gmra.mxu0 %v2862_v35  ;;  %2202 = vmatprep.subr.mxu0 %v663_v41 }
 0x172   :  { %2119 = vmatprep.mubr.f32.mxu0 %v2864_v36  ;;  %2203 = vmatpush3.msra.mxu0 %v663_v41 }
 0x173   :  { %2204 = vmatprep.subr.mxu0 %v662_v43 }
 0x174   :  { %2205 = vmatpush3.msra.mxu0 %v662_v43 }
 0x175   :  { %2120 = vmatmul.mubr.f32.gmra.mxu0 %v2868_v37  ;;  %2206 = vmatprep.subr.mxu0 %v661_v45 }
 0x176   :  { %2207 = vmatpush3.msra.mxu0 %v661_v45 }
 0x177   :  { %2208 = vmatprep.subr.mxu0 %v660_v47 }
 0x178   :  { %2209 = vmatpush3.msra.mxu0 %v660_v47 }
 0x219   :  { %v2100_v57 = vpop.f32.mrf.mxu0 }
 0x21a   :  { %v533_v59 = vadd.f32 %v2100_v57, %v2044_v49 }
 0x21b   :  { %v527_v60 = vpop.f32.mrf.mxu0 }
 0x21c   :  { %v528_v62 = vadd.f32 %v527_v60, %v382_v50  ;;  %v613_v63 = vadd.f32 %v2874_v58, %v533_v59 }
 0x21d   :  { %v2103_v0 = vpop.f32.mrf.mxu0 }
 0x21e   :  { %v612_v1 = vadd.f32 %v2874_v58, %v528_v62  ;;  %v543_v2 = vadd.f32 %v2103_v0, %v2047_v51  ;;  %v629_v7 = vmax.f32 %v613_v63, 0.0 }
 0x21f   :  { %v537_v3 = vpop.f32.mrf.mxu0 }
 0x220   :  { %v628_v5 = vmax.f32 %v612_v1, 0.0  ;;  %v538_v6 = vadd.f32 %v537_v3, %v392_v52  ;;  %v615_v8 = vadd.f32 %v2874_v58, %v543_v2 }
 0x221   :  { %v2106_v9 = vpop.f32.mrf.mxu0 }
 0x222   :  { %v614_v10 = vadd.f32 %v2874_v58, %v538_v6  ;;  %v553_v11 = vadd.f32 %v2106_v9, %v2050_v53  ;;  %2154 = vmatprep.mubr.f32.mxu1 %v628_v5  ;;  %2210 = vmatprep.mubr.f32.mxu0 %v628_v5  ;;  %v631_v21 = vmax.f32 %v615_v8, 0.0 }
 0x223   :  { %v547_v13 = vpop.f32.mrf.mxu0  ;;  %2155 = vmatmul.mubr.f32.vlgmr.msra.gmra.mxu1 %v629_v7  ;;  %2211 = vmatmul.mubr.f32.vlgmr.msra.gmra.mxu0 %v629_v7 }
 0x224   :  { %v630_v17 = vmax.f32 %v614_v10, 0.0  ;;  %v548_v19 = vadd.f32 %v547_v13, %v402_v54  ;;  %v617_v23 = vadd.f32 %v2874_v58, %v553_v11 }
 0x225   :  { %v2109_v25 = vpop.f32.mrf.mxu0 }
 0x226   :  { %v616_v27 = vadd.f32 %v2874_v58, %v548_v19  ;;  %v563_v29 = vadd.f32 %v2109_v25, %v2053_v55  ;;  %2157 = vmatprep.mubr.f32.mxu1 %v630_v17  ;;  %2213 = vmatprep.mubr.f32.mxu0 %v630_v17  ;;  %v633_v40 = vmax.f32 %v617_v23, 0.0 }
 0x227   :  { %v557_v31 = vpop.f32.mrf.mxu0  ;;  %2158 = vmatmul.mubr.f32.gmra.mxu1 %v631_v21  ;;  %2214 = vmatmul.mubr.f32.gmra.mxu0 %v631_v21 }
 0x228   :  { %v632_v38 = vmax.f32 %v616_v27, 0.0  ;;  %v558_v39 = vadd.f32 %v557_v31, %v412_v56  ;;  %v619_v41 = vadd.f32 %v2874_v58, %v563_v29  ;;  %v442_v56 = vpop.f32.mrf.mxu1  ;;  %v1165_v27 = vld [vmem:[%s3112_s8 + $0x78] sm:$0xff]  ;;  %v1163_v29 = vld [vmem:[%s3112_s8 + $0x68] sm:$0xff] }
 0x229   :  { %v2112_v42 = vpop.f32.mrf.mxu0  ;;  %2290 = vmatprep.subr.mxu0 %v1165_v27  ;;  %v1161_v31 = vld [vmem:[%s3112_s8 + $0x58] sm:$0xff] }
 0x22a   :  { %v618_v43 = vadd.f32 %v2874_v58, %v558_v39  ;;  %v573_v44 = vadd.f32 %v2112_v42, %v2056_v61  ;;  %2160 = vmatprep.mubr.f32.mxu1 %v632_v38  ;;  %2216 = vmatprep.mubr.f32.mxu0 %v632_v38  ;;  %v635_v50 = vmax.f32 %v619_v41, 0.0  ;;  %v2065_v1 = vpop.f32.mrf.mxu1  ;;  %v1159_v38 = vld [vmem:[%s3112_s8 + $0x48] sm:$0xff]  ;;  %v1158_v39 = vld [vmem:[%s3112_s8 + $0x40] sm:$0xff]  ;;  %v1156_v41 = vld [vmem:[%s3112_s8 + $0x30] sm:$0xff] }
 0x22b   :  { %v567_v45 = vpop.f32.mrf.mxu0  ;;  %2161 = vmatmul.mubr.f32.gmra.mxu1 %v633_v40  ;;  %2217 = vmatmul.mubr.f32.gmra.mxu0 %v633_v40  ;;  %v1157_v40 = vld [vmem:[%s3112_s8 + $0x38] sm:$0xff]  ;;  %v1155_v42 = vld [vmem:[%s3112_s8 + $0x28] sm:$0xff] }
 0x22c   :  { %v634_v47 = vmax.f32 %v618_v43, 0.0  ;;  %v568_v49 = vadd.f32 %v567_v45, %v422_v4  ;;  %v621_v51 = vadd.f32 %v2874_v58, %v573_v44  ;;  %v452_v10 = vpop.f32.mrf.mxu1  ;;  %2291 = vmatpush3.msra.mxu0 %v1165_v27 }
 0x22d   :  { %v2115_v52 = vpop.f32.mrf.mxu0 }
 0x22e   :  { %v620_v53 = vadd.f32 %v2874_v58, %v568_v49  ;;  %v583_v54 = vadd.f32 %v2115_v52, %v2059_v15  ;;  %2163 = vmatprep.mubr.f32.mxu1 %v634_v47  ;;  %2219 = vmatprep.mubr.f32.mxu0 %v634_v47  ;;  %v637_v60 = vmax.f32 %v621_v51, 0.0 }
 0x22f   :  { %v577_v55 = vpop.f32.mrf.mxu0  ;;  %2164 = vmatmul.mubr.f32.gmra.mxu1 %v635_v50  ;;  %2220 = vmatmul.mubr.f32.gmra.mxu0 %v635_v50 }
 0x230   :  { %v636_v57 = vmax.f32 %v620_v53, 0.0  ;;  %v578_v59 = vadd.f32 %v577_v55, %v432_v33  ;;  %v623_v61 = vadd.f32 %v2874_v58, %v583_v54  ;;  %v1160_v33 = vld [vmem:[%s3112_s8 + $0x50] sm:$0xff] }
 0x231   :  { %v2118_v62 = vpop.f32.mrf.mxu0 }
 0x232   :  { %v622_v63 = vadd.f32 %v2874_v58, %v578_v59  ;;  %v593_v0 = vadd.f32 %v2118_v62, %v2062_v46  ;;  %2166 = vmatprep.mubr.f32.mxu1 %v636_v57  ;;  %2222 = vmatprep.mubr.f32.mxu0 %v636_v57  ;;  %v639_v5 = vmax.f32 %v623_v61, 0.0  ;;  %v1181_v61 = vld [vmem:[%s3113_s9 + $0x78] sm:$0xff]  ;;  %v1180_v62 = vld [vmem:[%s3113_s9 + $0x70] sm:$0xff] }
 0x233   :  { %v587_v2 = vpop.f32.mrf.mxu0  ;;  %2167 = vmatmul.mubr.f32.gmra.mxu1 %v637_v60  ;;  %2223 = vmatmul.mubr.f32.gmra.mxu0 %v637_v60 }
 0x234   :  { %v638_v3 = vmax.f32 %v622_v63, 0.0  ;;  %v588_v4 = vadd.f32 %v587_v2, %v442_v56  ;;  %v625_v6 = vadd.f32 %v2874_v58, %v593_v0  ;;  %v1179_v63 = vld [vmem:[%s3113_s9 + $0x68] sm:$0xff]  ;;  %v1178_v0 = vld [vmem:[%s3113_s9 + $0x60] sm:$0xff] }
 0x235   :  { %v2121_v7 = vpop.f32.mrf.mxu0  ;;  %v1150_v2 = vld [vmem:[%s3112_s8] sm:$0xff] }
 0x236   :  { %v624_v8 = vadd.f32 %v2874_v58, %v588_v4  ;;  %v603_v9 = vadd.f32 %v2121_v7, %v2065_v1  ;;  %2169 = vmatprep.mubr.f32.mxu1 %v638_v3  ;;  %2225 = vmatprep.mubr.f32.mxu0 %v638_v3  ;;  %v641_v17 = vmax.f32 %v625_v6, 0.0  ;;  %v1167_v1 = vld [vmem:[%s3113_s9 + $0x8] sm:$0xff]  ;;  %v1166_v3 = vld [vmem:[%s3113_s9] sm:$0xff] }
 0x237   :  { %v597_v11 = vpop.f32.mrf.mxu0  ;;  %2170 = vmatmul.mubr.f32.gmra.mxu1 %v639_v5  ;;  %2226 = vmatmul.mubr.f32.gmra.mxu0 %v639_v5 }
 0x238   :  { %v640_v13 = vmax.f32 %v624_v8, 0.0  ;;  %v598_v15 = vadd.f32 %v597_v11, %v452_v10  ;;  %v627_v19 = vadd.f32 %v2874_v58, %v603_v9 }
 0x23a   :  { %v626_v21 = vadd.f32 %v2874_v58, %v598_v15  ;;  %2172 = vmatprep.mubr.f32.mxu1 %v640_v13  ;;  %2228 = vmatprep.mubr.f32.mxu0 %v640_v13  ;;  %v643_v25 = vmax.f32 %v627_v19, 0.0  ;;  %v1164_v58 = vld [vmem:[%s3112_s8 + $0x70] sm:$0xff]  ;;  %v3007_v15 = vld [vmem:[%s3111_s7] ss:$0 sm:$0xff] }
 0x23b   :  { %2173 = vmatmul.mubr.f32.gmra.mxu1 %v641_v17  ;;  %2229 = vmatmul.mubr.f32.gmra.mxu0 %v641_v17 }
 0x23c   :  { %v642_v23 = vmax.f32 %v626_v21, 0.0  ;;  %2292 = vmatprep.subr.mxu0 %v1164_v58 }
 0x23d   :  { %2293 = vmatpush3.msra.mxu0 %v1164_v58 }
 0x23e   :  { %2175 = vmatprep.mubr.f32.mxu1 %v642_v23  ;;  %2231 = vmatprep.mubr.f32.mxu0 %v642_v23 }
 0x23f   :  { %2176 = vmatmul.mubr.f32.gmra.mxu1 %v643_v25  ;;  %2232 = vmatmul.mubr.f32.gmra.mxu0 %v643_v25 }
 0x240   :  { %2266 = vmatprep.mubr.f32.mxu1 %v2809_v48  ;;  %v1162_v48 = vld [vmem:[%s3112_s8 + $0x60] sm:$0xff]  ;;  %2294 = vmatprep.subr.mxu0 %v1163_v29 }
 0x241   :  { %2295 = vmatpush3.msra.mxu0 %v1163_v29 }
 0x242   :  { %2296 = vmatprep.subr.mxu0 %v1162_v48 }
 0x243   :  { %2297 = vmatpush3.msra.mxu0 %v1162_v48 }
 0x244   :  { %2298 = vmatprep.subr.mxu0 %v1161_v31 }
 0x245   :  { %2299 = vmatpush3.msra.mxu0 %v1161_v31 }
 0x246   :  { %2300 = vmatprep.subr.mxu0 %v1160_v33 }
 0x247   :  { %2301 = vmatpush3.msra.mxu0 %v1160_v33 }
 0x248   :  { %2302 = vmatprep.subr.mxu0 %v1159_v38 }
 0x249   :  { %2303 = vmatpush3.msra.mxu0 %v1159_v38 }
 0x24a   :  { %2304 = vmatprep.subr.mxu0 %v1158_v39 }
 0x24b   :  { %2305 = vmatpush3.msra.mxu0 %v1158_v39 }
 0x24c   :  { %2306 = vmatprep.subr.mxu0 %v1157_v40 }
 0x24d   :  { %2307 = vmatpush3.msra.mxu0 %v1157_v40 }
 0x24e   :  { %2308 = vmatprep.subr.mxu0 %v1156_v41 }
 0x24f   :  { %2309 = vmatpush3.msra.mxu0 %v1156_v41 }
 0x250   :  { %2310 = vmatprep.subr.mxu0 %v1155_v42 }
 0x251   :  { %2311 = vmatpush3.msra.mxu0 %v1155_v42 }
 0x2e3   :  { %v2156_v43 = vpop.f32.mrf.mxu1  ;;  %v2212_v4 = vpop.f32.mrf.mxu0 }
 0x2e5   :  { %v743_v44 = vpop.f32.mrf.mxu1  ;;  %v888_v5 = vpop.f32.mrf.mxu0 }
 0x2e7   :  { %v2159_v45 = vpop.f32.mrf.mxu1  ;;  %v2215_v6 = vpop.f32.mrf.mxu0 }
 0x2e9   :  { %v753_v46 = vpop.f32.mrf.mxu1  ;;  %v898_v7 = vpop.f32.mrf.mxu0 }
 0x2eb   :  { %v2162_v47 = vpop.f32.mrf.mxu1  ;;  %v2218_v8 = vpop.f32.mrf.mxu0 }
 0x2ed   :  { %v763_v49 = vpop.f32.mrf.mxu1  ;;  %v908_v9 = vpop.f32.mrf.mxu0 }
 0x2ef   :  { %v2165_v50 = vpop.f32.mrf.mxu1  ;;  %v2221_v10 = vpop.f32.mrf.mxu0 }
 0x2f1   :  { %v773_v51 = vpop.f32.mrf.mxu1  ;;  %v918_v11 = vpop.f32.mrf.mxu0 }
 0x2f3   :  { %v2168_v52 = vpop.f32.mrf.mxu1  ;;  %v2224_v19 = vpop.f32.mrf.mxu0 }
 0x2f5   :  { %v783_v53 = vpop.f32.mrf.mxu1  ;;  %v928_v48 = vpop.f32.mrf.mxu0 }
 0x2f7   :  { %v2171_v54 = vpop.f32.mrf.mxu1 }
 0x2f9   :  { %v793_v55 = vpop.f32.mrf.mxu1 }
 0x2fb   :  { %v2174_v56 = vpop.f32.mrf.mxu1 }
 0x2fd   :  { %v803_v57 = vpop.f32.mrf.mxu1 }
 0x2ff   :  { %v2177_v59 = vpop.f32.mrf.mxu1 }
 0x300   :  { %2234 = vmatprep.subr.mxu1 %v2177_v59 }
 0x301   :  { %v813_v60 = vpop.f32.mrf.mxu1  ;;  %2235 = vmatpush3.msra.mxu1 %v2177_v59 }
 0x302   :  { %2236 = vmatprep.subr.mxu1 %v813_v60 }
 0x303   :  { %2237 = vmatpush3.msra.mxu1 %v813_v60 }
 0x304   :  { %2238 = vmatprep.subr.mxu1 %v2174_v56 }
 0x305   :  { %2239 = vmatpush3.msra.mxu1 %v2174_v56 }
 0x306   :  { %2240 = vmatprep.subr.mxu1 %v803_v57 }
 0x307   :  { %2241 = vmatpush3.msra.mxu1 %v803_v57 }
 0x308   :  { %2242 = vmatprep.subr.mxu1 %v2171_v54 }
 0x309   :  { %2243 = vmatpush3.msra.mxu1 %v2171_v54 }
 0x30a   :  { %2244 = vmatprep.subr.mxu1 %v793_v55 }
 0x30b   :  { %2245 = vmatpush3.msra.mxu1 %v793_v55 }
 0x30c   :  { %2246 = vmatprep.subr.mxu1 %v2168_v52 }
 0x30d   :  { %2247 = vmatpush3.msra.mxu1 %v2168_v52 }
 0x30e   :  { %2248 = vmatprep.subr.mxu1 %v783_v53 }
 0x30f   :  { %2249 = vmatpush3.msra.mxu1 %v783_v53 }
 0x310   :  { %2250 = vmatprep.subr.mxu1 %v2165_v50 }
 0x311   :  { %2251 = vmatpush3.msra.mxu1 %v2165_v50 }
 0x312   :  { %2252 = vmatprep.subr.mxu1 %v773_v51 }
 0x313   :  { %2253 = vmatpush3.msra.mxu1 %v773_v51 }
 0x314   :  { %2254 = vmatprep.subr.mxu1 %v2162_v47 }
 0x315   :  { %2255 = vmatpush3.msra.mxu1 %v2162_v47 }
 0x316   :  { %2256 = vmatprep.subr.mxu1 %v763_v49 }
 0x317   :  { %2257 = vmatpush3.msra.mxu1 %v763_v49 }
 0x318   :  { %2258 = vmatprep.subr.mxu1 %v2159_v45 }
 0x319   :  { %2259 = vmatpush3.msra.mxu1 %v2159_v45 }
 0x31a   :  { %2260 = vmatprep.subr.mxu1 %v753_v46 }
 0x31b   :  { %2261 = vmatpush3.msra.mxu1 %v753_v46 }
 0x31c   :  { %2262 = vmatprep.subr.mxu1 %v2156_v43 }
 0x31d   :  { %2263 = vmatpush3.msra.mxu1 %v2156_v43 }
 0x31e   :  { %2264 = vmatprep.subr.mxu1 %v743_v44 }
 0x31f   :  { %2265 = vmatpush3.msra.mxu1 %v743_v44  ;;  %v2227_v44 = vpop.f32.mrf.mxu0 }
 0x320   :  { %2267 = vmatmul.mubr.f32.vlgmr.msra.gmra.mxu1 %v2826_v12  ;;  %2346 = vmatprep.subr.mxu1 %v1181_v61  ;;  %v1177_v12 = vld [vmem:[%s3113_s9 + $0x58] sm:$0xff] }
 0x321   :  { %2269 = vmatprep.mubr.f32.mxu1 %v2828_v14  ;;  %2347 = vmatpush3.msra.mxu1 %v1181_v61  ;;  %v1176_v14 = vld [vmem:[%s3113_s9 + $0x50] sm:$0xff]  ;;  %v938_v54 = vpop.f32.mrf.mxu0 }
 0x322   :  { %2348 = vmatprep.subr.mxu1 %v1180_v62 }
 0x323   :  { %2349 = vmatpush3.msra.mxu1 %v1180_v62 }
 0x324   :  { %2270 = vmatmul.mubr.f32.gmra.mxu1 %v2832_v16  ;;  %2350 = vmatprep.subr.mxu1 %v1179_v63  ;;  %v1175_v16 = vld [vmem:[%s3113_s9 + $0x48] sm:$0xff] }
 0x325   :  { %2272 = vmatprep.mubr.f32.mxu1 %v2834_v18  ;;  %2351 = vmatpush3.msra.mxu1 %v1179_v63  ;;  %v1174_v18 = vld [vmem:[%s3113_s9 + $0x40] sm:$0xff] }
 0x326   :  { %2352 = vmatprep.subr.mxu1 %v1178_v0 }
 0x327   :  { %2353 = vmatpush3.msra.mxu1 %v1178_v0  ;;  %v2230_v0 = vpop.f32.mrf.mxu0 }
 0x328   :  { %2273 = vmatmul.mubr.f32.gmra.mxu1 %v2838_v20  ;;  %2354 = vmatprep.subr.mxu1 %v1177_v12  ;;  %v1173_v20 = vld [vmem:[%s3113_s9 + $0x38] sm:$0xff] }
 0x329   :  { %2275 = vmatprep.mubr.f32.mxu1 %v2840_v22  ;;  %2355 = vmatpush3.msra.mxu1 %v1177_v12  ;;  %v1172_v22 = vld [vmem:[%s3113_s9 + $0x30] sm:$0xff] }
 0x32a   :  { %2356 = vmatprep.subr.mxu1 %v1176_v14 }
 0x32b   :  { %2357 = vmatpush3.msra.mxu1 %v1176_v14 }
 0x32c   :  { %2276 = vmatmul.mubr.f32.gmra.mxu1 %v2844_v24  ;;  %2358 = vmatprep.subr.mxu1 %v1175_v16  ;;  %v1171_v24 = vld [vmem:[%s3113_s9 + $0x28] sm:$0xff] }
 0x32d   :  { %2278 = vmatprep.mubr.f32.mxu1 %v2846_v26  ;;  %2359 = vmatpush3.msra.mxu1 %v1175_v16 }
 0x32e   :  { %2360 = vmatprep.subr.mxu1 %v1174_v18 }
 0x32f   :  { %2361 = vmatpush3.msra.mxu1 %v1174_v18 }
 0x330   :  { %2279 = vmatmul.mubr.f32.gmra.mxu1 %v2850_v28  ;;  %2362 = vmatprep.subr.mxu1 %v1173_v20  ;;  %v1154_v28 = vld [vmem:[%s3112_s8 + $0x20] sm:$0xff] }
 0x331   :  { %2281 = vmatprep.mubr.f32.mxu1 %v2852_v30  ;;  %2363 = vmatpush3.msra.mxu1 %v1173_v20  ;;  %v1170_v30 = vld [vmem:[%s3113_s9 + $0x20] sm:$0xff] }
 0x332   :  { %2364 = vmatprep.subr.mxu1 %v1172_v22  ;;  %2312 = vmatprep.subr.mxu0 %v1154_v28 }
 0x333   :  { %2365 = vmatpush3.msra.mxu1 %v1172_v22  ;;  %2313 = vmatpush3.msra.mxu0 %v1154_v28 }
 0x334   :  { %2282 = vmatmul.mubr.f32.gmra.mxu1 %v2856_v32  ;;  %2366 = vmatprep.subr.mxu1 %v1171_v24  ;;  %v1153_v32 = vld [vmem:[%s3112_s8 + $0x18] sm:$0xff] }
 0x335   :  { %2284 = vmatprep.mubr.f32.mxu1 %v2858_v34  ;;  %2367 = vmatpush3.msra.mxu1 %v1171_v24  ;;  %v1169_v34 = vld [vmem:[%s3113_s9 + $0x18] sm:$0xff] }
 0x336   :  { %2368 = vmatprep.subr.mxu1 %v1170_v30  ;;  %2314 = vmatprep.subr.mxu0 %v1153_v32 }
 0x337   :  { %2369 = vmatpush3.msra.mxu1 %v1170_v30  ;;  %2315 = vmatpush3.msra.mxu0 %v1153_v32  ;;  %v948_v30 = vpop.f32.mrf.mxu0 }
 0x338   :  { %2285 = vmatmul.mubr.f32.gmra.mxu1 %v2862_v35  ;;  %2370 = vmatprep.subr.mxu1 %v1169_v34  ;;  %v1152_v35 = vld [vmem:[%s3112_s8 + $0x10] sm:$0xff] }
 0x339   :  { %2287 = vmatprep.mubr.f32.mxu1 %v2864_v36  ;;  %2371 = vmatpush3.msra.mxu1 %v1169_v34  ;;  %v1168_v36 = vld [vmem:[%s3113_s9 + $0x10] sm:$0xff] }
 0x33a   :  { %2316 = vmatprep.subr.mxu0 %v1152_v35  ;;  %2372 = vmatprep.subr.mxu1 %v1168_v36 }
 0x33b   :  { %2317 = vmatpush3.msra.mxu0 %v1152_v35  ;;  %2373 = vmatpush3.msra.mxu1 %v1168_v36 }
 0x33c   :  { %2288 = vmatmul.mubr.f32.gmra.mxu1 %v2868_v37  ;;  %v1151_v37 = vld [vmem:[%s3112_s8 + $0x8] sm:$0xff]  ;;  %2374 = vmatprep.subr.mxu1 %v1167_v1 }
 0x33d   :  { %2318 = vmatprep.subr.mxu0 %v1151_v37  ;;  %2375 = vmatpush3.msra.mxu1 %v1167_v1 }
 0x33e   :  { %2319 = vmatpush3.msra.mxu0 %v1151_v37  ;;  %2376 = vmatprep.subr.mxu1 %v1166_v3 }
 0x33f   :  { %2320 = vmatprep.subr.mxu0 %v1150_v2  ;;  %2377 = vmatpush3.msra.mxu1 %v1166_v3 }
 0x340   :  { %2321 = vmatpush3.msra.mxu0 %v1150_v2 }
 0x3e0   :  { %v2268_v13 = vpop.f32.mrf.mxu1 }
 0x3e1   :  { %v1039_v17 = vadd.f32 %v2268_v13, %v2212_v4  ;;  %v2233_v4 = vpop.f32.mrf.mxu0 }
 0x3e2   :  { %v1033_v21 = vpop.f32.mrf.mxu1 }
 0x3e3   :  { %v1034_v23 = vadd.f32 %v1033_v21, %v888_v5  ;;  %v1119_v25 = vadd.f32 %v3007_v15, %v1039_v17  ;;  %v958_v17 = vpop.f32.mrf.mxu0 }
 0x3e4   :  { %v2271_v27 = vpop.f32.mrf.mxu1 }
 0x3e5   :  { %v1118_v58 = vadd.f32 %v3007_v15, %v1034_v23  ;;  %v1049_v29 = vadd.f32 %v2271_v27, %v2215_v6  ;;  %v1135_v39 = vmax.f32 %v1119_v25, 0.0 }
 0x3e6   :  { %v1043_v31 = vpop.f32.mrf.mxu1 }
 0x3e7   :  { %v1134_v33 = vmax.f32 %v1118_v58, 0.0  ;;  %v1044_v38 = vadd.f32 %v1043_v31, %v898_v7  ;;  %v1121_v40 = vadd.f32 %v3007_v15, %v1049_v29  ;;  %v2497_v31 = vld [vmem:[#allocation2] sm:$0xff] }
 0x3e8   :  { %v2274_v41 = vpop.f32.mrf.mxu1 }
 0x3e9   :  { %v1120_v42 = vadd.f32 %v3007_v15, %v1044_v38  ;;  %v1059_v43 = vadd.f32 %v2274_v41, %v2218_v8  ;;  %2322 = vmatprep.mubr.f32.mxu0 %v1134_v33  ;;  %2378 = vmatprep.mubr.f32.mxu1 %v1134_v33  ;;  %v1137_v49 = vmax.f32 %v1121_v40, 0.0 }
 0x3ea   :  { %v1053_v45 = vpop.f32.mrf.mxu1  ;;  %2323 = vmatmul.mubr.f32.vlgmr.msra.gmra.mxu0 %v1135_v39  ;;  %2379 = vmatmul.mubr.f32.vlgmr.msra.gmra.mxu1 %v1135_v39 }
 0x3eb   :  { %v1136_v46 = vmax.f32 %v1120_v42, 0.0  ;;  %v1054_v47 = vadd.f32 %v1053_v45, %v908_v9  ;;  %v1123_v50 = vadd.f32 %v3007_v15, %v1059_v43 }
 0x3ec   :  { %v2277_v51 = vpop.f32.mrf.mxu1 }
 0x3ed   :  { %v1122_v52 = vadd.f32 %v3007_v15, %v1054_v47  ;;  %v1069_v53 = vadd.f32 %v2277_v51, %v2221_v10  ;;  %2325 = vmatprep.mubr.f32.mxu0 %v1136_v46  ;;  %2381 = vmatprep.mubr.f32.mxu1 %v1136_v46  ;;  %v1139_v59 = vmax.f32 %v1123_v50, 0.0 }
 0x3ee   :  { %v1063_v55 = vpop.f32.mrf.mxu1  ;;  %2326 = vmatmul.mubr.f32.gmra.mxu0 %v1137_v49  ;;  %2382 = vmatmul.mubr.f32.gmra.mxu1 %v1137_v49 }
 0x3ef   :  { %v1138_v56 = vmax.f32 %v1122_v52, 0.0  ;;  %v1064_v57 = vadd.f32 %v1063_v55, %v918_v11  ;;  %v1125_v60 = vadd.f32 %v3007_v15, %v1069_v53  ;;  %v2498_v52 = vld [vmem:[#allocation2 + $0x8] sm:$0xff]  ;;  %v2501_v55 = vld [vmem:[#allocation2 + $0x50] sm:$0xff] }
 0x3f0   :  { %v2280_v61 = vpop.f32.mrf.mxu1  ;;  %v2499_v53 = vld [vmem:[#allocation2 + $0x48] sm:$0xff] }
 0x3f1   :  { %v1124_v62 = vadd.f32 %v3007_v15, %v1064_v57  ;;  %v1079_v63 = vadd.f32 %v2280_v61, %v2224_v19  ;;  %2328 = vmatprep.mubr.f32.mxu0 %v1138_v56  ;;  %2384 = vmatprep.mubr.f32.mxu1 %v1138_v56  ;;  %v1141_v18 = vmax.f32 %v1125_v60, 0.0  ;;  %v2502_v56 = vld [vmem:[#allocation2 + $0x18] sm:$0xff]  ;;  %v2505_v60 = vld [vmem:[#allocation2 + $0x60] sm:$0xff]  ;;  %v2506_v61 = vld [vmem:[#allocation2 + $0x28] sm:$0xff] }
 0x3f2   :  { %v1073_v12 = vpop.f32.mrf.mxu1  ;;  %2329 = vmatmul.mubr.f32.gmra.mxu0 %v1139_v59  ;;  %2385 = vmatmul.mubr.f32.gmra.mxu1 %v1139_v59  ;;  %v2503_v57 = vld [vmem:[#allocation2 + $0x58] sm:$0xff]  ;;  %v2504_v59 = vld [vmem:[#allocation2 + $0x20] sm:$0xff] }
 0x3f3   :  { %v1140_v14 = vmax.f32 %v1124_v62, 0.0  ;;  %v1074_v16 = vadd.f32 %v1073_v12, %v928_v48  ;;  %v1127_v20 = vadd.f32 %v3007_v15, %v1079_v63  ;;  %v2507_v62 = vld [vmem:[#allocation2 + $0x68] sm:$0xff]  ;;  %v2508_v63 = vld [vmem:[#allocation2 + $0x30] sm:$0xff]  ;;  %v2510_v12 = vld [vmem:[#allocation2 + $0x38] sm:$0xff] }
 0x3f4   :  { %v2283_v22 = vpop.f32.mrf.mxu1 }
 0x3f5   :  { %v1126_v24 = vadd.f32 %v3007_v15, %v1074_v16  ;;  %v1089_v28 = vadd.f32 %v2283_v22, %v2227_v44  ;;  %2331 = vmatprep.mubr.f32.mxu0 %v1140_v14  ;;  %2387 = vmatprep.mubr.f32.mxu1 %v1140_v14  ;;  %v1143_v36 = vmax.f32 %v1127_v20, 0.0  ;;  %v2511_v14 = vld [vmem:[#allocation2 + $0x78] sm:$0xff] }
 0x3f6   :  { %v1083_v32 = vpop.f32.mrf.mxu1  ;;  %2332 = vmatmul.mubr.f32.gmra.mxu0 %v1141_v18  ;;  %2388 = vmatmul.mubr.f32.gmra.mxu1 %v1141_v18 }
 0x3f7   :  { %v1142_v34 = vmax.f32 %v1126_v24, 0.0  ;;  %v1084_v35 = vadd.f32 %v1083_v32, %v938_v54  ;;  %v1129_v37 = vadd.f32 %v3007_v15, %v1089_v28  ;;  %v2500_v54 = vld [vmem:[#allocation2 + $0x10] sm:$0xff] }
 0x3f8   :  { %v2286_v1 = vpop.f32.mrf.mxu1 }
 0x3f9   :  { %v1128_v2 = vadd.f32 %v3007_v15, %v1084_v35  ;;  %v1099_v3 = vadd.f32 %v2286_v1, %v2230_v0  ;;  %2334 = vmatprep.mubr.f32.mxu0 %v1142_v34  ;;  %2390 = vmatprep.mubr.f32.mxu1 %v1142_v34  ;;  %v1145_v8 = vmax.f32 %v1129_v37, 0.0  ;;  %v2509_v0 = vld [vmem:[#allocation2 + $0x70] sm:$0xff] }
 0x3fa   :  { %v1093_v5 = vpop.f32.mrf.mxu1  ;;  %2335 = vmatmul.mubr.f32.gmra.mxu0 %v1143_v36  ;;  %2391 = vmatmul.mubr.f32.gmra.mxu1 %v1143_v36 }
 0x3fb   :  { %v1144_v6 = vmax.f32 %v1128_v2, 0.0  ;;  %v1094_v7 = vadd.f32 %v1093_v5, %v948_v30  ;;  %v1131_v9 = vadd.f32 %v3007_v15, %v1099_v3  ;;  %v1665_v5 = vld [vmem:[%s3114_s10] ss:$0 sm:$0xff] }
 0x3fc   :  { %v2289_v10 = vpop.f32.mrf.mxu1 }
 0x3fd   :  { %v1130_v11 = vadd.f32 %v3007_v15, %v1094_v7  ;;  %v1109_v13 = vadd.f32 %v2289_v10, %v2233_v4  ;;  %2337 = vmatprep.mubr.f32.mxu0 %v1144_v6  ;;  %2393 = vmatprep.mubr.f32.mxu1 %v1144_v6  ;;  %v1147_v25 = vmax.f32 %v1131_v9, 0.0 }
 0x3fe   :  { %v1103_v19 = vpop.f32.mrf.mxu1  ;;  %2338 = vmatmul.mubr.f32.gmra.mxu0 %v1145_v8  ;;  %2394 = vmatmul.mubr.f32.gmra.mxu1 %v1145_v8 }
 0x3ff   :  { %v1146_v21 = vmax.f32 %v1130_v11, 0.0  ;;  %v1104_v23 = vadd.f32 %v1103_v19, %v958_v17  ;;  %v1133_v27 = vadd.f32 %v3007_v15, %v1109_v13 }
 0x401   :  { %v1132_v58 = vadd.f32 %v3007_v15, %v1104_v23  ;;  %2340 = vmatprep.mubr.f32.mxu0 %v1146_v21  ;;  %2396 = vmatprep.mubr.f32.mxu1 %v1146_v21  ;;  %v1149_v48 = vmax.f32 %v1133_v27, 0.0 }
 0x402   :  { %2341 = vmatmul.mubr.f32.gmra.mxu0 %v1147_v25  ;;  %2397 = vmatmul.mubr.f32.gmra.mxu1 %v1147_v25 }
 0x403   :  { %v1148_v29 = vmax.f32 %v1132_v58, 0.0 }
 0x405   :  { %2343 = vmatprep.mubr.f32.mxu0 %v1148_v29  ;;  %2399 = vmatprep.mubr.f32.mxu1 %v1148_v29 }
 0x406   :  { %2344 = vmatmul.mubr.f32.gmra.mxu0 %v1149_v48  ;;  %2400 = vmatmul.mubr.f32.gmra.mxu1 %v1149_v48 }
 0x407   :  { %2434 = vmatprep.mubr.f32.mxu0 %v2497_v31  ;;  %2446 = vmatprep.mubr.f32.mxu1 %v2846_v26 }
 0x4aa   :  { %v3026_v33 = vpop.f32.mrf.mxu0  ;;  %v2380_v16 = vpop.f32.mrf.mxu1 }
 0x4ac   :  { %v3028_v38 = vpop.f32.mrf.mxu0  ;;  %v1394_v18 = vpop.f32.mrf.mxu1 }
 0x4ae   :  { %v3030_v39 = vpop.f32.mrf.mxu0  ;;  %v2383_v20 = vpop.f32.mrf.mxu1 }
 0x4b0   :  { %v3032_v15 = vpop.f32.mrf.mxu0  ;;  %v1404_v22 = vpop.f32.mrf.mxu1 }
 0x4b2   :  { %v2330_v40 = vpop.f32.mrf.mxu0  ;;  %v2386_v24 = vpop.f32.mrf.mxu1 }
 0x4b4   :  { %v1269_v41 = vpop.f32.mrf.mxu0  ;;  %v1414_v28 = vpop.f32.mrf.mxu1 }
 0x4b6   :  { %v2333_v42 = vpop.f32.mrf.mxu0  ;;  %v2389_v30 = vpop.f32.mrf.mxu1 }
 0x4b8   :  { %v1279_v43 = vpop.f32.mrf.mxu0  ;;  %v3050_v32 = vpop.f32.mrf.mxu1 }
 0x4ba   :  { %v2336_v44 = vpop.f32.mrf.mxu0  ;;  %v2392_v34 = vpop.f32.mrf.mxu1 }
 0x4bc   :  { %v1289_v45 = vpop.f32.mrf.mxu0  ;;  %v1434_v35 = vpop.f32.mrf.mxu1 }
 0x4be   :  { %v2339_v46 = vpop.f32.mrf.mxu0  ;;  %v2395_v36 = vpop.f32.mrf.mxu1 }
 0x4c0   :  { %v1299_v47 = vpop.f32.mrf.mxu0  ;;  %v1444_v37 = vpop.f32.mrf.mxu1 }
 0x4c2   :  { %v2342_v49 = vpop.f32.mrf.mxu0  ;;  %v2398_v1 = vpop.f32.mrf.mxu1 }
 0x4c4   :  { %v1309_v50 = vpop.f32.mrf.mxu0  ;;  %v1454_v2 = vpop.f32.mrf.mxu1 }
 0x4c6   :  { %v2345_v51 = vpop.f32.mrf.mxu0  ;;  %v2401_v3 = vpop.f32.mrf.mxu1 }
 0x4c7   :  { %2402 = vmatprep.subr.mxu0 %v2345_v51  ;;  %2458 = vmatprep.subr.mxu1 %v2345_v51 }
 0x4c8   :  { %v1319_v26 = vpop.f32.mrf.mxu0  ;;  %2403 = vmatpush3.msra.mxu0 %v2345_v51  ;;  %2474 = vmatpush3.msra.mxu1 %v2345_v51  ;;  %v1464_v4 = vpop.f32.mrf.mxu1 }
 0x4c9   :  { %2404 = vmatprep.subr.mxu0 %v1319_v26  ;;  %2459 = vmatprep.subr.mxu1 %v1319_v26 }
 0x4ca   :  { %2405 = vmatpush3.msra.mxu0 %v1319_v26  ;;  %2475 = vmatpush3.msra.mxu1 %v1319_v26 }
 0x4cb   :  { %2406 = vmatprep.subr.mxu0 %v2342_v49  ;;  %2460 = vmatprep.subr.mxu1 %v2342_v49 }
 0x4cc   :  { %2407 = vmatpush3.msra.mxu0 %v2342_v49  ;;  %2476 = vmatpush3.msra.mxu1 %v2342_v49 }
 0x4cd   :  { %2408 = vmatprep.subr.mxu0 %v1309_v50  ;;  %2461 = vmatprep.subr.mxu1 %v1309_v50 }
 0x4ce   :  { %2409 = vmatpush3.msra.mxu0 %v1309_v50  ;;  %2477 = vmatpush3.msra.mxu1 %v1309_v50 }
 0x4cf   :  { %2410 = vmatprep.subr.mxu0 %v2339_v46  ;;  %2462 = vmatprep.subr.mxu1 %v2339_v46 }
 0x4d0   :  { %2411 = vmatpush3.msra.mxu0 %v2339_v46  ;;  %2478 = vmatpush3.msra.mxu1 %v2339_v46 }
 0x4d1   :  { %2412 = vmatprep.subr.mxu0 %v1299_v47  ;;  %2463 = vmatprep.subr.mxu1 %v1299_v47 }
 0x4d2   :  { %2413 = vmatpush3.msra.mxu0 %v1299_v47  ;;  %2479 = vmatpush3.msra.mxu1 %v1299_v47 }
 0x4d3   :  { %2414 = vmatprep.subr.mxu0 %v2336_v44  ;;  %2464 = vmatprep.subr.mxu1 %v2336_v44 }
 0x4d4   :  { %2415 = vmatpush3.msra.mxu0 %v2336_v44  ;;  %2480 = vmatpush3.msra.mxu1 %v2336_v44 }
 0x4d5   :  { %2416 = vmatprep.subr.mxu0 %v1289_v45  ;;  %2465 = vmatprep.subr.mxu1 %v1289_v45 }
 0x4d6   :  { %2417 = vmatpush3.msra.mxu0 %v1289_v45  ;;  %2481 = vmatpush3.msra.mxu1 %v1289_v45 }
 0x4d7   :  { %2418 = vmatprep.subr.mxu0 %v2333_v42  ;;  %2466 = vmatprep.subr.mxu1 %v2333_v42 }
 0x4d8   :  { %2419 = vmatpush3.msra.mxu0 %v2333_v42  ;;  %2482 = vmatpush3.msra.mxu1 %v2333_v42 }
 0x4d9   :  { %2420 = vmatprep.subr.mxu0 %v1279_v43  ;;  %2467 = vmatprep.subr.mxu1 %v1279_v43 }
 0x4da   :  { %2421 = vmatpush3.msra.mxu0 %v1279_v43  ;;  %2483 = vmatpush3.msra.mxu1 %v1279_v43 }
 0x4db   :  { %2422 = vmatprep.subr.mxu0 %v2330_v40  ;;  %2468 = vmatprep.subr.mxu1 %v2330_v40 }
 0x4dc   :  { %2423 = vmatpush3.msra.mxu0 %v2330_v40  ;;  %2484 = vmatpush3.msra.mxu1 %v2330_v40 }
 0x4dd   :  { %2424 = vmatprep.subr.mxu0 %v1269_v41  ;;  %2469 = vmatprep.subr.mxu1 %v1269_v41 }
 0x4de   :  { %2425 = vmatpush3.msra.mxu0 %v1269_v41  ;;  %2485 = vmatpush3.msra.mxu1 %v1269_v41 }
 0x4df   :  { %2426 = vmatprep.subr.mxu0 %v3030_v39  ;;  %2470 = vmatprep.subr.mxu1 %v3030_v39 }
 0x4e0   :  { %2427 = vmatpush3.msra.mxu0 %v3030_v39  ;;  %2486 = vmatpush3.msra.mxu1 %v3030_v39 }
 0x4e1   :  { %2428 = vmatprep.subr.mxu0 %v3032_v15  ;;  %2471 = vmatprep.subr.mxu1 %v3032_v15 }
 0x4e2   :  { %2429 = vmatpush3.msra.mxu0 %v3032_v15  ;;  %2487 = vmatpush3.msra.mxu1 %v3032_v15 }
 0x4e3   :  { %2430 = vmatprep.subr.mxu0 %v3026_v33  ;;  %2472 = vmatprep.subr.mxu1 %v3026_v33 }
 0x4e4   :  { %2431 = vmatpush3.msra.mxu0 %v3026_v33  ;;  %2488 = vmatpush3.msra.mxu1 %v3026_v33 }
 0x4e5   :  { %2432 = vmatprep.subr.mxu0 %v3028_v38  ;;  %2473 = vmatprep.subr.mxu1 %v3028_v38 }
 0x4e6   :  { %2433 = vmatpush3.msra.mxu0 %v3028_v38  ;;  %2489 = vmatpush3.msra.mxu1 %v3028_v38 }
 0x4e7   :  { %2435 = vmatmul.mubr.f32.vlgmr.msra.gmra.mxu0 %v2498_v52  ;;  %2447 = vmatmul.mubr.f32.vlgmr.msra.gmra.mxu1 %v2499_v53 }
 0x4e8   :  { %2437 = vmatprep.mubr.f32.mxu0 %v2500_v54  ;;  %2449 = vmatprep.mubr.f32.mxu1 %v2501_v55 }
 0x4eb   :  { %2438 = vmatmul.mubr.f32.gmra.mxu0 %v2502_v56  ;;  %2450 = vmatmul.mubr.f32.gmra.mxu1 %v2503_v57 }
 0x4ec   :  { %2440 = vmatprep.mubr.f32.mxu0 %v2504_v59  ;;  %2452 = vmatprep.mubr.f32.mxu1 %v2505_v60 }
 0x4ef   :  { %2441 = vmatmul.mubr.f32.gmra.mxu0 %v2506_v61  ;;  %2453 = vmatmul.mubr.f32.gmra.mxu1 %v2507_v62 }
 0x4f0   :  { %2443 = vmatprep.mubr.f32.mxu0 %v2508_v63  ;;  %2455 = vmatprep.mubr.f32.mxu1 %v2509_v0 }
 0x4f3   :  { %2444 = vmatmul.mubr.f32.gmra.mxu0 %v2510_v12  ;;  %2456 = vmatmul.mubr.f32.gmra.mxu1 %v2511_v14 }
 0x5a7   :  { %v2436_v6 = vpop.f32.mrf.mxu0  ;;  %v2448_v7 = vpop.f32.mrf.mxu1 }
 0x5a8   :  { %v1545_v8 = vadd.f32 %v2436_v6, %v2380_v16  ;;  %v1585_v9 = vadd.f32 %v2448_v7, %v2392_v34 }
 0x5a9   :  { %v1539_v10 = vpop.f32.mrf.mxu0  ;;  %v1579_v11 = vpop.f32.mrf.mxu1 }
 0x5aa   :  { %v1625_v13 = vadd.f32 %v1665_v5, %v1545_v8  ;;  %v1633_v17 = vadd.f32 %v1665_v5, %v1585_v9  ;;  %v1540_v19 = vadd.f32 %v1539_v10, %v1394_v18  ;;  %v1580_v21 = vadd.f32 %v1579_v11, %v1434_v35 }
 0x5ab   :  { %v2439_v23 = vpop.f32.mrf.mxu0  ;;  %v2451_v25 = vpop.f32.mrf.mxu1 }
 0x5ac   :  { %1641 = vst [vmem:[%s3115_s11 + $0x8] sm:$0xff] %v1625_v13  ;;  %1649 = vst [vmem:[%s3115_s11 + $0x48] sm:$0xff] %v1633_v17  ;;  %v1624_v27 = vadd.f32 %v1665_v5, %v1540_v19  ;;  %v1632_v58 = vadd.f32 %v1665_v5, %v1580_v21  ;;  %v1555_v29 = vadd.f32 %v2439_v23, %v2383_v20 }
 0x5ad   :  { %v1595_v48 = vadd.f32 %v2451_v25, %v2395_v36  ;;  %v1549_v31 = vpop.f32.mrf.mxu0  ;;  %v1589_v33 = vpop.f32.mrf.mxu1 }
 0x5ae   :  { %1640 = vst [vmem:[%s3115_s11] sm:$0xff] %v1624_v27  ;;  %1648 = vst [vmem:[%s3115_s11 + $0x40] sm:$0xff] %v1632_v58  ;;  %v1627_v38 = vadd.f32 %v1665_v5, %v1555_v29  ;;  %v1550_v15 = vadd.f32 %v1549_v31, %v1404_v22  ;;  %v1590_v40 = vadd.f32 %v1589_v33, %v1444_v37 }
 0x5af   :  { %v1635_v39 = vadd.f32 %v1665_v5, %v1595_v48  ;;  %v2442_v41 = vpop.f32.mrf.mxu0  ;;  %v2454_v42 = vpop.f32.mrf.mxu1 }
 0x5b0   :  { %1643 = vst [vmem:[%s3115_s11 + $0x18] sm:$0xff] %v1627_v38  ;;  %v1626_v43 = vadd.f32 %v1665_v5, %v1550_v15  ;;  %v1634_v44 = vadd.f32 %v1665_v5, %v1590_v40  ;;  %v1565_v45 = vadd.f32 %v2442_v41, %v2386_v24  ;;  %v1605_v46 = vadd.f32 %v2454_v42, %v2398_v1 }
 0x5b1   :  { %1651 = vst [vmem:[%s3115_s11 + $0x58] sm:$0xff] %v1635_v39  ;;  %v1559_v47 = vpop.f32.mrf.mxu0  ;;  %v1599_v49 = vpop.f32.mrf.mxu1 }
 0x5b2   :  { %1642 = vst [vmem:[%s3115_s11 + $0x10] sm:$0xff] %v1626_v43  ;;  %1650 = vst [vmem:[%s3115_s11 + $0x50] sm:$0xff] %v1634_v44  ;;  %v1629_v50 = vadd.f32 %v1665_v5, %v1565_v45  ;;  %v1637_v51 = vadd.f32 %v1665_v5, %v1605_v46  ;;  %v1560_v26 = vadd.f32 %v1559_v47, %v1414_v28 }
 0x5b3   :  { %v1600_v52 = vadd.f32 %v1599_v49, %v1454_v2  ;;  %v2445_v53 = vpop.f32.mrf.mxu0  ;;  %v2457_v54 = vpop.f32.mrf.mxu1 }
 0x5b4   :  { %1645 = vst [vmem:[%s3115_s11 + $0x28] sm:$0xff] %v1629_v50  ;;  %1653 = vst [vmem:[%s3115_s11 + $0x68] sm:$0xff] %v1637_v51  ;;  %v1628_v55 = vadd.f32 %v1665_v5, %v1560_v26  ;;  %v1575_v57 = vadd.f32 %v2445_v53, %v2389_v30  ;;  %v1615_v59 = vadd.f32 %v2457_v54, %v2401_v3 }
 0x5b5   :  { %v1636_v56 = vadd.f32 %v1665_v5, %v1600_v52  ;;  %v1569_v60 = vpop.f32.mrf.mxu0  ;;  %v1609_v61 = vpop.f32.mrf.mxu1 }
 0x5b6   :  { %1644 = vst [vmem:[%s3115_s11 + $0x20] sm:$0xff] %v1628_v55  ;;  %v1631_v62 = vadd.f32 %v1665_v5, %v1575_v57  ;;  %v1639_v63 = vadd.f32 %v1665_v5, %v1615_v59  ;;  %v1570_v0 = vadd.f32 %v1569_v60, %v3050_v32  ;;  %v1610_v12 = vadd.f32 %v1609_v61, %v1464_v4 }
 0x5b7   :  { %1652 = vst [vmem:[%s3115_s11 + $0x60] sm:$0xff] %v1636_v56 }
 0x5b8   :  { %1647 = vst [vmem:[%s3115_s11 + $0x38] sm:$0xff] %v1631_v62  ;;  %1655 = vst [vmem:[%s3115_s11 + $0x78] sm:$0xff] %v1639_v63  ;;  %v1630_v14 = vadd.f32 %v1665_v5, %v1570_v0  ;;  %v1638_v16 = vadd.f32 %v1665_v5, %v1610_v12 }
 0x5ba   :  { %1646 = vst [vmem:[%s3115_s11 + $0x30] sm:$0xff] %v1630_v14  ;;  %1654 = vst [vmem:[%s3115_s11 + $0x70] sm:$0xff] %v1638_v16 }
 0x5bb   :  { %1660 = vsyncpa [#allocation3], 1 }
 0x5bc   :  { %1661 = vsyncpa [#allocation5], 1 }
 0x5bd   :  { %1662 = vsyncpa [#allocation8], 1 }

</bundles_post_ra>
